<compile_context>
chip_gen: v6e
topology: v6e:2x2x1
jax: 0.10.0
libtpu: 0.0.40
codegen_flags: <defaults>
</compile_context>

<pallas_src>
import functools

import jax
import jax.numpy as jnp
from jax.experimental import pallas as pl
from jax.experimental.pallas import tpu as pltpu


_NEG_INF = -1e30       # finite "masked" logit; avoids (-inf)-(-inf) -> NaN in the online max
_LEAKY_SLOPE = 0.01


def _round_up(x, m):
    return ((x + m - 1) // m) * m


def _pow2_floor(x):
    p = 1
    while p * 2 <= x:
        p *= 2
    return p


def _pow2_ceil(x):
    p = 1
    while p < x:
        p *= 2
    return p


def _plan_tiles(n, block_rows, block_cols, min_row_blocks=2):
    """Pick (n_pad, tm, tn).  Tiles are power-of-two multiples of 128 so both
    divide n_pad (N is padded UP instead of collapsing tiles for awkward N).
    tm is capped so there are >= min_row_blocks row blocks, keeping v7x's
    second TensorCore busy on the 'parallel' row axis."""
    cap = 128 * _pow2_ceil(-(-n // 128))                      # smallest pow2*128 covering n
    tm = min(128 * _pow2_floor(max(block_rows // 128, 1)), cap)
    tn = min(128 * _pow2_floor(max(block_cols // 128, 1)), cap)
    n_pad = _round_up(n, max(tm, tn))
    while n_pad // tm < min_row_blocks and tm > 128:
        tm //= 2
    return n_pad, tm, tn


def prepare_adjacency(adj, n_pad, tm, tn):
    """One-time (cacheable across forwards) adjacency prep: padded int8 mask
    with forced self-loops (also on the padded diagonal, keeping every row's
    softmax denominator > 0), plus per-(row-block, col-block) nonzero counts
    used for the empty-tile skip.  Hoisted off the per-call hot path."""
    n = adj.shape[0]
    a = jnp.zeros((n_pad, n_pad), jnp.int8)
    a = a.at[:n, :n].set((adj != 0).astype(jnp.int8))
    diag = jnp.arange(n_pad)
    a = a.at[diag, diag].set(1)
    counts = jnp.sum(
        a.reshape(n_pad // tm, tm, n_pad // tn, tn).astype(jnp.int32), axis=(1, 3))
    return a, counts.reshape(-1)


# ----------------------------------------------------------------------------
# Kernel 1: fused projection.  One lane-dense MXU matmul produces
#   [ X' | a_i | a_j | 1 | 0... ]   (a_i = X'.s1, a_j = X'.s2 as extra W^T
# columns; the ones column comes from a bias column of X_pad so the row-sum
# can later ride a free MXU column).
# ----------------------------------------------------------------------------
def _project_kernel(x_ref, wt_ref, xp_ref):
    xp_ref[...] = jnp.dot(x_ref[...], wt_ref[...],
                          preferred_element_type=jnp.float32)


# ----------------------------------------------------------------------------
# Kernel 2: tiled attention with online (flash-style) softmax.
#   grid = (row blocks [parallel], column blocks [arbitrary/reduction])
# out_ref doubles as the running numerator (resident across the column axis);
# its 'ones' column carries the running softmax denominator l.
# ----------------------------------------------------------------------------
def _gat_attn_kernel(counts_ref, ai_ref, ajt_ref, adj_ref, xpv_ref,
                     out_ref, m_out_ref, m_sc,
                     *, local_softmax: bool, use_sigmoid: bool, ones_col: int):
    i = pl.program_id(0)
    j = pl.program_id(1)
    nj = pl.num_programs(1)

    @pl.when(j == 0)
    def _init():
        m_sc[...] = jnp.full(m_sc.shape, _NEG_INF, jnp.float32)
        out_ref[...] = jnp.zeros_like(out_ref)

    # Skip tiles containing no edges at all: an all-masked tile contributes
    # nothing to the numerator / denominator and leaves the running max alone.
    @pl.when(counts_ref[i * nj + j] > 0)
    def _update():
        e = ai_ref[...] + ajt_ref[...]                  # (tm,1)+(1,tn) -> (tm,tn)
        raw = jnp.maximum(e, _LEAKY_SLOPE * e)          # leaky_relu, slope 0.01
        mask = adj_ref[...] != 0                        # int8 adjacency, self loops pre-folded
        s = jnp.where(mask, raw, _NEG_INF)

        m_prev = m_sc[...]
        m_new = jnp.maximum(m_prev, jnp.max(s, axis=1, keepdims=True))
        corr = jnp.exp(m_prev - m_new)
        # NOTE: this where is NOT redundant — for a row fully masked in this
        # tile while m is still _NEG_INF, exp(s - m_new) would otherwise be 1.
        p = jnp.where(mask, jnp.exp(s - m_new), 0.0)

        # bf16 MXU operands (stats stay f32).  The bf16 'ones' value column
        # accumulates the row-sum l in the f32 accumulator, replacing the
        # cross-lane jnp.sum.
        out_ref[...] = corr * out_ref[...] + jnp.dot(
            p.astype(jnp.bfloat16), xpv_ref[...],
            preferred_element_type=jnp.float32)
        m_sc[...] = m_new

    @pl.when(j == nj - 1)
    def _finalize():
        m_out_ref[...] = m_sc[...]
        if local_softmax:
            blk = out_ref[...]
            l = blk[:, ones_col:ones_col + 1]
            # EUP reciprocal + one Newton step instead of N^2 divides.
            inv_l = pl.reciprocal(l, approx=True)
            inv_l = inv_l * (2.0 - l * inv_l)
            res = blk * inv_l
            if use_sigmoid:
                res = 1.0 / (1.0 + jnp.exp(-res))
            out_ref[...] = res
        # Global softmax: leave the un-normalized numerator in out_ref (its
        # ones column holds l); the tiny O(N) cross-row finish is in the wrapper.


# ----------------------------------------------------------------------------
# Wrapper
# ----------------------------------------------------------------------------
def graph_attention_conv(X, adj, W, S, *, softmax_global=False, activation=None,
                         block_rows=1024, block_cols=1024, adj_prep=None):
    """X: (N, in_features), adj: (N, N), W: (out, in), S: (1, 2*out).
    adj_prep: optional (padded int8 adjacency, block counts) from
    prepare_adjacency() built with the same (block_rows, block_cols) plan —
    cache it across calls to keep the O(N^2) prep off the hot path."""
    n, f_in = X.shape
    f_out = W.shape[0]

    n_pad, tm, tn = _plan_tiles(n, block_rows, block_cols)
    fin_pad = _round_up(f_in + 1, 128)     # +1 spare input column drives the ones column
    f_pad = _round_up(f_out + 3, 128)      # +a_i, +a_j, +ones -> lane-dense (x128)
    ai_col, aj_col, ones_col = f_out, f_out + 1, f_out + 2

    # ---- parameter prep (tiny, O(f_in*f_out)) ----
    Wt = W.T.astype(jnp.float32)                          # (f_in, f_out)
    s1 = S[0, :f_out].astype(jnp.float32)
    s2 = S[0, f_out:].astype(jnp.float32)
    wt_aug = jnp.zeros((fin_pad, f_pad), jnp.float32)
    wt_aug = wt_aug.at[:f_in, :f_out].set(Wt)
    wt_aug = wt_aug.at[:f_in, ai_col].set(Wt @ s1)        # column of a_i
    wt_aug = wt_aug.at[:f_in, aj_col].set(Wt @ s2)        # column of a_j
    wt_aug = wt_aug.at[fin_pad - 1, ones_col].set(1.0)    # bias row -> ones column of X'

    x_pad = jnp.zeros((n_pad, fin_pad), jnp.float32)
    x_pad = x_pad.at[:n, :f_in].set(X.astype(jnp.float32))
    x_pad = x_pad.at[:, fin_pad - 1].set(1.0)             # drives the ones column for ALL rows

    # ---- adjacency (prefer the cached path) ----
    if adj_prep is None:
        adj_i8, counts = prepare_adjacency(adj, n_pad, tm, tn)
    else:
        adj_i8, counts = adj_prep
        assert adj_i8.shape == (n_pad, n_pad), "adj_prep built for a different tile plan"
        assert counts.shape == ((n_pad // tm) * (n_pad // tn),)
    counts = counts.astype(jnp.int32)

    # ---- kernel 1: fused projection (run once) ----
    tmp = min(tm, 512)                                     # always divides n_pad
    xp_aug = pl.pallas_call(
        _project_kernel,
        out_shape=jax.ShapeDtypeStruct((n_pad, f_pad), jnp.float32),
        grid_spec=pltpu.PrefetchScalarGridSpec(
            num_scalar_prefetch=0,
            grid=(n_pad // tmp,),
            in_specs=[pl.BlockSpec((tmp, fin_pad), lambda i: (i, 0)),
                      pl.BlockSpec((fin_pad, f_pad), lambda i: (0, 0))],
            out_specs=pl.BlockSpec((tmp, f_pad), lambda i: (i, 0))),
        compiler_params=pltpu.CompilerParams(
            dimension_semantics=("parallel",)),
    )(x_pad, wt_aug)

    a_i = xp_aug[:, ai_col:ai_col + 1]                      # (n_pad, 1) f32 score half
    a_jt = xp_aug[:, aj_col:aj_col + 1].reshape(1, n_pad)   # (1, n_pad) f32 score half
    xpv = xp_aug.astype(jnp.bfloat16)                       # bf16 value stream (half HBM traffic)

    # ---- kernel 2: tiled attention + online softmax ----
    kernel = functools.partial(
        _gat_attn_kernel,
        local_softmax=not softmax_global,
        use_sigmoid=(activation is not None) and (not softmax_global),
        ones_col=ones_col)

    out_pad, m_row = pl.pallas_call(
        kernel,
        out_shape=(jax.ShapeDtypeStruct((n_pad, f_pad), jnp.float32),
                   jax.ShapeDtypeStruct((n_pad, 1), jnp.float32)),
        grid_spec=pltpu.PrefetchScalarGridSpec(
            num_scalar_prefetch=1,                           # per-block edge counts (SMEM)
            grid=(n_pad // tm, n_pad // tn),
            in_specs=[pl.BlockSpec((tm, 1), lambda i, j, c: (i, 0)),      # a_i rows (f32)
                      pl.BlockSpec((1, tn), lambda i, j, c: (0, j)),      # a_j cols (f32)
                      pl.BlockSpec((tm, tn), lambda i, j, c: (i, j)),     # adj tile (int8)
                      pl.BlockSpec((tn, f_pad), lambda i, j, c: (j, 0))], # X' values (bf16)
            out_specs=(pl.BlockSpec((tm, f_pad), lambda i, j, c: (i, 0)), # resident accumulator
                       pl.BlockSpec((tm, 1), lambda i, j, c: (i, 0))),    # per-row max (for global)
            scratch_shapes=[pltpu.VMEM((tm, 1), jnp.float32)]),           # running max
        compiler_params=pltpu.CompilerParams(
            dimension_semantics=("parallel", "arbitrary"),
            vmem_limit_bytes=32 * 1024 * 1024),              # safe on v7x's 64 MiB VMEM
    )(counts, a_i, a_jt, adj_i8, xpv)

    out = out_pad[:n, :f_out]
    if softmax_global:
        # O(N) cross-row finish of the global softmax (trivial next to the kernel).
        m_v = m_row[:n, 0]
        l_v = out_pad[:n, ones_col]                          # l rode the MXU ones column
        gmax = jnp.max(m_v)
        z = jnp.sum(l_v * jnp.exp(m_v - gmax))
        out = out * (jnp.exp(m_v - gmax) / z)[:, None]
        if activation is not None:
            out = jax.nn.sigmoid(out)
    return out


# ----------------------------------------------------------------------------
# Pure-JAX dense reference matching the PyTorch forward.
# ----------------------------------------------------------------------------
def _reference(X, adj, W, S, *, softmax_global=False, activation=None):
    f_out = W.shape[0]
    n = X.shape[0]
    Xp = X @ W.T
    s1 = S[0, :f_out]
    s2 = S[0, f_out:]
    e = (Xp @ s1)[:, None] + (Xp @ s2)[None, :]
    raw = jnp.where(e >= 0, e, 0.01 * e)
    mask = jnp.where(jnp.eye(n, dtype=bool), 1.0, (adj != 0).astype(jnp.float32))
    p = mask * jnp.exp(raw)
    if softmax_global:
        alpha = p / jnp.sum(p)
    else:
        alpha = p / jnp.sum(p, axis=1, keepdims=True)
    out = alpha @ Xp
    if activation is not None:
        out = jax.nn.sigmoid(out)
    return out


if __name__ == "__main__":
    key = jax.random.PRNGKey(0)
    k_x, k_adj, k_w, k_s = jax.random.split(key, 4)

    num_nodes = 200          # pads to 256
    in_features = 8
    out_features = 16

    X = jax.random.normal(k_x, (num_nodes, in_features), dtype=jnp.float32)
    adj = (jax.random.uniform(k_adj, (num_nodes, num_nodes)) < 0.1).astype(jnp.float32)

    w_bound = 1.0 / jnp.sqrt(in_features)
    s_bound = 1.0 / jnp.sqrt(2 * out_features)
    W = jax.random.uniform(k_w, (out_features, in_features),
                           minval=-w_bound, maxval=w_bound, dtype=jnp.float32)
    S = jax.random.uniform(k_s, (1, 2 * out_features),
                           minval=-s_bound, maxval=s_bound, dtype=jnp.float32)

    # bf16 MXU operands => relaxed tolerance vs the f32 reference.
    TOL = 2e-2

    # ---- local softmax, no activation; small 128x128 tiles force a 2x2 grid
    # so the online softmax + block-skip machinery is actually exercised.
    # (Production default tiles are 1024x1024.)
    n_pad, tm, tn = _plan_tiles(num_nodes, 128, 128)
    adj_prep = prepare_adjacency(adj, n_pad, tm, tn)        # cached, off the hot path

    run_local = jax.jit(functools.partial(
        graph_attention_conv, softmax_global=False, activation=None,
        block_rows=128, block_cols=128))
    out = jax.block_until_ready(run_local(X, adj, W, S, adj_prep=adj_prep))
    ref = _reference(X, adj, W, S, softmax_global=False, activation=None)
    err = float(jnp.max(jnp.abs(out - ref)))
    assert jnp.allclose(out, ref, atol=TOL, rtol=TOL), f"local mismatch, max|err|={err}"

    # ---- very sparse graph: exercises the empty-tile skip (off-diagonal
    # blocks have zero edges) and the forced self-loop path.
    adj_sparse = jnp.zeros((num_nodes, num_nodes), jnp.float32)
    adj_sparse = adj_sparse.at[3, 7].set(1.0).at[10, 50].set(1.0).at[60, 2].set(1.0)
    out_s = jax.block_until_ready(run_local(X, adj_sparse, W, S))
    ref_s = _reference(X, adj_sparse, W, S, softmax_global=False, activation=None)
    err_s = float(jnp.max(jnp.abs(out_s - ref_s)))
    assert jnp.allclose(out_s, ref_s, atol=TOL, rtol=TOL), f"sparse mismatch, max|err|={err_s}"

    # ---- global softmax + sigmoid, default (large) tile plan.
    run_glob = jax.jit(functools.partial(
        graph_attention_conv, softmax_global=True, activation="sigmoid"))
    outg = jax.block_until_ready(run_glob(X, adj, W, S))
    refg = _reference(X, adj, W, S, softmax_global=True, activation="sigmoid")
    errg = float(jnp.max(jnp.abs(outg - refg)))
    assert jnp.allclose(outg, refg, atol=TOL, rtol=TOL), f"global mismatch, max|err|={errg}"

    print("KERNEL_OK")
</pallas_src>

<mosaic_0001>
module attributes {stable_mosaic.version = 11 : i64} {
  func.func @_project_kernel(%arg0: i32, %arg1: memref<128x128xf32, #tpu.memory_space<vmem>>, %arg2: memref<128x128xf32, #tpu.memory_space<vmem>>, %arg3: memref<128x128xf32, #tpu.memory_space<vmem>>) attributes {dimension_semantics = [#tpu.dimension_semantics<parallel>], iteration_bounds = array<i64: 2>, scalar_prefetch = 0 : i64, scratch_operands = 0 : i64, tpu.core_type = #tpu.core_type<tc>, window_params = [{transform_indices = @transform_0, window_bounds = array<i64: 128, 128>}, {pipeline_mode = #tpu.pipeline_mode<synchronous>, transform_indices = @transform_1, window_bounds = array<i64: 128, 128>}, {transform_indices = @transform_2, window_bounds = array<i64: 128, 128>}]} {
    %c0 = arith.constant 0 : index
    %c0_0 = arith.constant 0 : index
    %0 = vector.load %arg1[%c0, %c0_0] : memref<128x128xf32, #tpu.memory_space<vmem>>, vector<128x128xf32>
    %c0_1 = arith.constant 0 : index
    %c0_2 = arith.constant 0 : index
    %1 = vector.load %arg2[%c0_1, %c0_2] : memref<128x128xf32, #tpu.memory_space<vmem>>, vector<128x128xf32>
    %cst = arith.constant dense<0.000000e+00> : vector<128x128xf32>
    %2 = tpu.matmul %0, %1, %cst {dimension_numbers = #tpu.dot_dimension_numbers<[1], [0], [0], [1], [0, 0, 1, 1], [], []>} : vector<128x128xf32>, vector<128x128xf32>, vector<128x128xf32> -> vector<128x128xf32>
    %c0_3 = arith.constant 0 : index
    %c0_4 = arith.constant 0 : index
    %3 = vector.load %arg3[%c0_3, %c0_4] : memref<128x128xf32, #tpu.memory_space<vmem>>, vector<128x128xf32>
    tpu.vector_store %arg3[%c0_3, %c0_4], %2 {strides = array<i32>} : memref<128x128xf32, #tpu.memory_space<vmem>>, vector<128x128xf32>,
    return
  }
  func.func @transform_0(%arg0: i32) -> (i32, i32) {
    %c0_i32 = arith.constant 0 : i32
    %c0_i32_0 = arith.constant 0 : i32
    return %arg0, %c0_i32 : i32, i32
  }
  func.func @transform_1(%arg0: i32) -> (i32, i32) {
    %c0_i32 = arith.constant 0 : i32
    %c0_i32_0 = arith.constant 0 : i32
    %c0_i32_1 = arith.constant 0 : i32
    return %c0_i32, %c0_i32_0 : i32, i32
  }
  func.func @transform_2(%arg0: i32) -> (i32, i32) {
    %c0_i32 = arith.constant 0 : i32
    %c0_i32_0 = arith.constant 0 : i32
    return %arg0, %c0_i32 : i32, i32
  }
}

module attributes {stable_mosaic.version = 11 : i64} {
  func.func @_gat_attn_kernel(%arg0: i32, %arg1: i32, %arg2: memref<4xi32, #tpu.memory_space<smem>>, %arg3: memref<128x1xf32, #tpu.memory_space<vmem>>, %arg4: memref<1x128xf32, #tpu.memory_space<vmem>>, %arg5: memref<128x128xi8, #tpu.memory_space<vmem>>, %arg6: memref<128x128xbf16, #tpu.memory_space<vmem>>, %arg7: memref<128x128xf32, #tpu.memory_space<vmem>>, %arg8: memref<128x1xf32, #tpu.memory_space<vmem>>, %arg9: memref<128x1xf32, #tpu.memory_space<vmem>>) attributes {dimension_semantics = [#tpu.dimension_semantics<parallel>, #tpu.dimension_semantics<arbitrary>], iteration_bounds = array<i64: 2, 2>, scalar_prefetch = 1 : i64, scratch_operands = 1 : i64, tpu.core_type = #tpu.core_type<tc>, window_params = [{transform_indices = @transform_0, window_bounds = array<i64: 128, 1>}, {transform_indices = @transform_1, window_bounds = array<i64: 1, 128>}, {transform_indices = @transform_2, window_bounds = array<i64: 128, 128>}, {transform_indices = @transform_3, window_bounds = array<i64: 128, 128>}, {transform_indices = @transform_4, window_bounds = array<i64: 128, 128>}, {transform_indices = @transform_5, window_bounds = array<i64: 128, 1>}]} {
    %c0_i32 = arith.constant 0 : i32
    %0 = arith.cmpi eq, %arg1, %c0_i32 : i32
    %1 = arith.extui %0 : i1 to i32
    %c0_i32_0 = arith.constant 0 : i32
    %2 = arith.cmpi ne, %1, %c0_i32_0 : i32
    scf.if %2 {
      %cst = arith.constant -1.000000e+30 : f32
      %13 = vector.broadcast %cst : f32 to vector<128x1xf32>
      %c0 = arith.constant 0 : index
      %c0_4 = arith.constant 0 : index
      %14 = vector.load %arg9[%c0, %c0_4] : memref<128x1xf32, #tpu.memory_space<vmem>>, vector<128x1xf32>
      tpu.vector_store %arg9[%c0, %c0_4], %13 {strides = array<i32>} : memref<128x1xf32, #tpu.memory_space<vmem>>, vector<128x1xf32>,
      %cst_5 = arith.constant 0.000000e+00 : f32
      %15 = vector.broadcast %cst_5 : f32 to vector<128x128xf32>
      %c0_6 = arith.constant 0 : index
      %c0_7 = arith.constant 0 : index
      %16 = vector.load %arg7[%c0_6, %c0_7] : memref<128x128xf32, #tpu.memory_space<vmem>>, vector<128x128xf32>
      tpu.vector_store %arg7[%c0_6, %c0_7], %15 {strides = array<i32>} : memref<128x128xf32, #tpu.memory_space<vmem>>, vector<128x128xf32>,
    } else {
    }
    %c2_i32 = arith.constant 2 : i32
    %3 = arith.muli %arg0, %c2_i32 : i32
    %4 = arith.addi %3, %arg1 : i32
    %5 = arith.index_cast %4 : i32 to index
    %6 = memref.load %arg2[%5] : memref<4xi32, #tpu.memory_space<smem>>
    %c0_i32_1 = arith.constant 0 : i32
    %7 = arith.cmpi sgt, %6, %c0_i32_1 : i32
    %8 = arith.extui %7 : i1 to i32
    %c0_i32_2 = arith.constant 0 : i32
    %9 = arith.cmpi ne, %8, %c0_i32_2 : i32
    scf.if %9 {
      %c0 = arith.constant 0 : index
      %c0_4 = arith.constant 0 : index
      %13 = vector.load %arg3[%c0, %c0_4] : memref<128x1xf32, #tpu.memory_space<vmem>>, vector<128x1xf32>
      %c0_5 = arith.constant 0 : index
      %c0_6 = arith.constant 0 : index
      %14 = vector.load %arg4[%c0_5, %c0_6] : memref<1x128xf32, #tpu.memory_space<vmem>>, vector<1x128xf32>
      %15 = vector.broadcast %13 : vector<128x1xf32> to vector<128x128xf32>
      %16 = vector.broadcast %14 : vector<1x128xf32> to vector<128x128xf32>
      %17 = arith.addf %15, %16 : vector<128x128xf32>
      %cst = arith.constant 0.00999999977 : f32
      %18 = vector.broadcast %cst : f32 to vector<128x128xf32>
      %19 = arith.mulf %18, %17 : vector<128x128xf32>
      %20 = arith.maximumf %17, %19 : vector<128x128xf32>
      %c0_7 = arith.constant 0 : index
      %c0_8 = arith.constant 0 : index
      %21 = vector.load %arg5[%c0_7, %c0_8] : memref<128x128xi8, #tpu.memory_space<vmem>>, vector<128x128xi8>
      %c0_i8 = arith.constant 0 : i8
      %22 = vector.broadcast %c0_i8 : i8 to vector<128x128xi8>
      %23 = arith.cmpi ne, %21, %22 : vector<128x128xi8>
      %cst_9 = arith.constant -1.000000e+30 : f32
      %24 = vector.broadcast %cst_9 : f32 to vector<128x128xf32>
      %25 = arith.select %23, %20, %24 : vector<128x128xi1>, vector<128x128xf32>
      %c0_10 = arith.constant 0 : index
      %c0_11 = arith.constant 0 : index
      %26 = vector.load %arg9[%c0_10, %c0_11] : memref<128x1xf32, #tpu.memory_space<vmem>>, vector<128x1xf32>
      %cst_12 = arith.constant dense<0xFF800000> : vector<128xf32>
      %27 = vector.multi_reduction <maximumf>, %25, %cst_12 [1] : vector<128x128xf32> to vector<128xf32>
      %28 = vector.shape_cast %27 : vector<128xf32> to vector<128x1xf32>
      %29 = arith.maximumf %26, %28 : vector<128x1xf32>
      %30 = arith.subf %26, %29 : vector<128x1xf32>
      %31 = math.exp %30 : vector<128x1xf32>
      %32 = vector.broadcast %29 : vector<128x1xf32> to vector<128x128xf32>
      %33 = arith.subf %25, %32 : vector<128x128xf32>
      %34 = math.exp %33 : vector<128x128xf32>
      %cst_13 = arith.constant 0.000000e+00 : f32
      %35 = vector.broadcast %cst_13 : f32 to vector<128x128xf32>
      %36 = arith.select %23, %34, %35 : vector<128x128xi1>, vector<128x128xf32>
      %c0_14 = arith.constant 0 : index
      %c0_15 = arith.constant 0 : index
      %37 = vector.load %arg7[%c0_14, %c0_15] : memref<128x128xf32, #tpu.memory_space<vmem>>, vector<128x128xf32>
      %38 = vector.broadcast %31 : vector<128x1xf32> to vector<128x128xf32>
      %39 = arith.mulf %38, %37 : vector<128x128xf32>
      %40 = arith.truncf %36 : vector<128x128xf32> to vector<128x128xbf16>
      %c0_16 = arith.constant 0 : index
      %c0_17 = arith.constant 0 : index
      %41 = vector.load %arg6[%c0_16, %c0_17] : memref<128x128xbf16, #tpu.memory_space<vmem>>, vector<128x128xbf16>
      %cst_18 = arith.constant dense<0.000000e+00> : vector<128x128xf32>
      %42 = tpu.matmul %40, %41, %cst_18 {dimension_numbers = #tpu.dot_dimension_numbers<[1], [0], [0], [1], [0, 0, 1, 1], [], []>} : vector<128x128xbf16>, vector<128x128xbf16>, vector<128x128xf32> -> vector<128x128xf32>
      %43 = arith.addf %39, %42 : vector<128x128xf32>
      %c0_19 = arith.constant 0 : index
      %c0_20 = arith.constant 0 : index
      %44 = vector.load %arg7[%c0_19, %c0_20] : memref<128x128xf32, #tpu.memory_space<vmem>>, vector<128x128xf32>
      tpu.vector_store %arg7[%c0_19, %c0_20], %43 {strides = array<i32>} : memref<128x128xf32, #tpu.memory_space<vmem>>, vector<128x128xf32>,
      %c0_21 = arith.constant 0 : index
      %c0_22 = arith.constant 0 : index
      %45 = vector.load %arg9[%c0_21, %c0_22] : memref<128x1xf32, #tpu.memory_space<vmem>>, vector<128x1xf32>
      tpu.vector_store %arg9[%c0_21, %c0_22], %29 {strides = array<i32>} : memref<128x1xf32, #tpu.memory_space<vmem>>, vector<128x1xf32>,
    } else {
    }
    %c1_i32 = arith.constant 1 : i32
    %10 = arith.cmpi eq, %arg1, %c1_i32 : i32
    %11 = arith.extui %10 : i1 to i32
    %c0_i32_3 = arith.constant 0 : i32
    %12 = arith.cmpi ne, %11, %c0_i32_3 : i32
    scf.if %12 {
      %c0 = arith.constant 0 : index
      %c0_4 = arith.constant 0 : index
      %13 = vector.load %arg9[%c0, %c0_4] : memref<128x1xf32, #tpu.memory_space<vmem>>, vector<128x1xf32>
      %c0_5 = arith.constant 0 : index
      %c0_6 = arith.constant 0 : index
      %14 = vector.load %arg8[%c0_5, %c0_6] : memref<128x1xf32, #tpu.memory_space<vmem>>, vector<128x1xf32>
      tpu.vector_store %arg8[%c0_5, %c0_6], %13 {strides = array<i32>} : memref<128x1xf32, #tpu.memory_space<vmem>>, vector<128x1xf32>,
      %c0_7 = arith.constant 0 : index
      %c0_8 = arith.constant 0 : index
      %15 = vector.load %arg7[%c0_7, %c0_8] : memref<128x128xf32, #tpu.memory_space<vmem>>, vector<128x128xf32>
      %16 = vector.extract_strided_slice %15 {offsets = [0, 18], sizes = [128, 1], strides = [1, 1]} : vector<128x128xf32> to vector<128x1xf32>
      %17 = tpu.reciprocal %16 {approx = true} : vector<128x1xf32> -> vector<128x1xf32>
      %18 = arith.mulf %16, %17 : vector<128x1xf32>
      %cst = arith.constant 2.000000e+00 : f32
      %19 = vector.broadcast %cst : f32 to vector<128x1xf32>
      %20 = arith.subf %19, %18 : vector<128x1xf32>
      %21 = arith.mulf %17, %20 : vector<128x1xf32>
      %22 = vector.broadcast %21 : vector<128x1xf32> to vector<128x128xf32>
      %23 = arith.mulf %15, %22 : vector<128x128xf32>
      %c0_9 = arith.constant 0 : index
      %c0_10 = arith.constant 0 : index
      %24 = vector.load %arg7[%c0_9, %c0_10] : memref<128x128xf32, #tpu.memory_space<vmem>>, vector<128x128xf32>
      tpu.vector_store %arg7[%c0_9, %c0_10], %23 {strides = array<i32>} : memref<128x128xf32, #tpu.memory_space<vmem>>, vector<128x128xf32>,
    } else {
    }
    return
  }
  func.func @transform_0(%arg0: i32, %arg1: i32, %arg2: memref<4xi32, #tpu.memory_space<smem>>) -> (i32, i32) {
    %c0_i32 = arith.constant 0 : i32
    %c0_i32_0 = arith.constant 0 : i32
    return %arg0, %c0_i32 : i32, i32
  }
  func.func @transform_1(%arg0: i32, %arg1: i32, %arg2: memref<4xi32, #tpu.memory_space<smem>>) -> (i32, i32) {
    %c0_i32 = arith.constant 0 : i32
    %c0_i32_0 = arith.constant 0 : i32
    return %c0_i32, %arg1 : i32, i32
  }
  func.func @transform_2(%arg0: i32, %arg1: i32, %arg2: memref<4xi32, #tpu.memory_space<smem>>) -> (i32, i32) {
    %c0_i32 = arith.constant 0 : i32
    return %arg0, %arg1 : i32, i32
  }
  func.func @transform_3(%arg0: i32, %arg1: i32, %arg2: memref<4xi32, #tpu.memory_space<smem>>) -> (i32, i32) {
    %c0_i32 = arith.constant 0 : i32
    %c0_i32_0 = arith.constant 0 : i32
    return %arg1, %c0_i32 : i32, i32
  }
  func.func @transform_4(%arg0: i32, %arg1: i32, %arg2: memref<4xi32, #tpu.memory_space<smem>>) -> (i32, i32) {
    %c0_i32 = arith.constant 0 : i32
    %c0_i32_0 = arith.constant 0 : i32
    return %arg0, %c0_i32 : i32, i32
  }
  func.func @transform_5(%arg0: i32, %arg1: i32, %arg2: memref<4xi32, #tpu.memory_space<smem>>) -> (i32, i32) {
    %c0_i32 = arith.constant 0 : i32
    %c0_i32_0 = arith.constant 0 : i32
    return %arg0, %c0_i32 : i32, i32
  }
}

</mosaic_0001>

<bundles_post_ra>
// kernel: graph_attention_conv.2
= control target key start
LH: loop header
LB: loop body
LE: loop exit
PB: predicated region body
PF: predicated region fallthrough
CT: control target
= control target key end

     0   :  { %s558_s9 = smov 0   ;;  %s668_s0 = inlined_call_operand.vmem [shape: f32[256,128], index: 0, kind: input, shape index: {}]   ;;  %s669_s1 = inlined_call_operand.vmem [shape: f32[128,128], index: 1, kind: input, shape index: {}]   ;;  %s670_s2 = inlined_call_operand.vmem [shape: f32[256,128], index: 2, kind: output, shape index: {}]  }
   0x1 LB: > { %s396_s10 = sadd.s32 4294967295, %s541_s9   ;;  %p400_p0 = scmp.ge.s32.totalorder %s541_s9, 1  ;;  %s541_s9 = sphi %s558_s9, %s12_s9  }
   0x2   : > { %p113_p1 = scmp.lt.s32.totalorder %s541_s9, 3 }
   0x4   : > { %p114_p2 = pnand %p400_p0, %p113_p1 }
   0x5   : > { %s401_s27 = sshll.u32 (!%p114_p2), %s396_s10, 4 }
   0x6   : > { %117 = sbr.rel (%p114_p2) target bundleno = 253 (0xfd), region = 28  ;;  %p136_p3 = scmp.lt.s32.totalorder (!%p114_p2), %s401_s27, 31 }
   0xb   : > { %v178_v0 = vld [vmem:[%s669_s1 + $0x78] sm:$0xff]  ;;  %v177_v1 = vld [vmem:[%s669_s1 + $0x70] sm:$0xff]  ;;  %v176_v2 = vld [vmem:[%s669_s1 + $0x68] sm:$0xff]  ;;  %s672_s27 = smov (!%p136_p3, %s401_s27), 31 }
   0xc   : > { %439 = vmatprep.subr.mxu0 %v178_v0  ;;  %495 = vmatprep.subr.mxu1 %v178_v0  ;;  %v175_v3 = vld [vmem:[%s669_s1 + $0x60] sm:$0xff]  ;;  %v174_v4 = vld [vmem:[%s669_s1 + $0x58] sm:$0xff]  ;;  %v173_v5 = vld [vmem:[%s669_s1 + $0x50] sm:$0xff]  ;;  %s402_s13 = sshll.u32 %s672_s27, 3 }
   0xd   : > { %440 = vmatpush3.msra.mxu0 %v178_v0  ;;  %511 = vmatpush3.msra.mxu1 %v178_v0  ;;  %v172_v6 = vld [vmem:[%s669_s1 + $0x48] sm:$0xff]  ;;  %v171_v7 = vld [vmem:[%s669_s1 + $0x40] sm:$0xff]  ;;  %v170_v8 = vld [vmem:[%s669_s1 + $0x38] sm:$0xff]  ;;  %s621_s18 = scalar_lea.vmem %s668_s0, %s402_s13  ;;  %s647_s23 = scalar_lea.vmem %s670_s2, %s402_s13 }
   0xe   : > { %441 = vmatprep.subr.mxu0 %v177_v1  ;;  %496 = vmatprep.subr.mxu1 %v177_v1  ;;  %v169_v9 = vld [vmem:[%s669_s1 + $0x30] sm:$0xff]  ;;  %v168_v10 = vld [vmem:[%s669_s1 + $0x28] sm:$0xff]  ;;  %v167_v11 = vld [vmem:[%s669_s1 + $0x20] sm:$0xff] }
   0xf   : > { %442 = vmatpush3.msra.mxu0 %v177_v1  ;;  %512 = vmatpush3.msra.mxu1 %v177_v1  ;;  %v166_v12 = vld [vmem:[%s669_s1 + $0x18] sm:$0xff]  ;;  %v165_v13 = vld [vmem:[%s669_s1 + $0x10] sm:$0xff]  ;;  %v164_v14 = vld [vmem:[%s669_s1 + $0x8] sm:$0xff] }
  0x10   : > { %443 = vmatprep.subr.mxu0 %v176_v2  ;;  %497 = vmatprep.subr.mxu1 %v176_v2  ;;  %v163_v15 = vld [vmem:[%s669_s1] sm:$0xff]  ;;  %v148_v18 = vld [vmem:[%s621_s18 + $0x8] sm:$0xff]  ;;  %v149_v20 = vld [vmem:[%s621_s18 + $0x10] sm:$0xff] }
  0x11   : > { %444 = vmatpush3.msra.mxu0 %v176_v2  ;;  %513 = vmatpush3.msra.mxu1 %v176_v2  ;;  %v147_v16 = vld [vmem:[%s621_s18] sm:$0xff]  ;;  %v156_v19 = vld [vmem:[%s621_s18 + $0x48] sm:$0xff]  ;;  %v157_v21 = vld [vmem:[%s621_s18 + $0x50] sm:$0xff] }
  0x12   : > { %445 = vmatprep.subr.mxu0 %v175_v3  ;;  %498 = vmatprep.subr.mxu1 %v175_v3  ;;  %v155_v17 = vld [vmem:[%s621_s18 + $0x40] sm:$0xff]  ;;  %v150_v22 = vld [vmem:[%s621_s18 + $0x18] sm:$0xff]  ;;  %v152_v26 = vld [vmem:[%s621_s18 + $0x28] sm:$0xff] }
  0x13   : > { %446 = vmatpush3.msra.mxu0 %v175_v3  ;;  %514 = vmatpush3.msra.mxu1 %v175_v3  ;;  %v158_v23 = vld [vmem:[%s621_s18 + $0x58] sm:$0xff]  ;;  %v151_v24 = vld [vmem:[%s621_s18 + $0x20] sm:$0xff]  ;;  %v160_v27 = vld [vmem:[%s621_s18 + $0x68] sm:$0xff] }
  0x14   : > { %447 = vmatprep.subr.mxu0 %v174_v4  ;;  %499 = vmatprep.subr.mxu1 %v174_v4  ;;  %v159_v25 = vld [vmem:[%s621_s18 + $0x60] sm:$0xff]  ;;  %v153_v28 = vld [vmem:[%s621_s18 + $0x30] sm:$0xff]  ;;  %v154_v30 = vld [vmem:[%s621_s18 + $0x38] sm:$0xff] }
  0x15   : > { %448 = vmatpush3.msra.mxu0 %v174_v4  ;;  %515 = vmatpush3.msra.mxu1 %v174_v4  ;;  %v161_v29 = vld [vmem:[%s621_s18 + $0x70] sm:$0xff]  ;;  %v162_v31 = vld [vmem:[%s621_s18 + $0x78] sm:$0xff] }
  0x16   : > { %449 = vmatprep.subr.mxu0 %v173_v5  ;;  %500 = vmatprep.subr.mxu1 %v173_v5 }
  0x17   : > { %450 = vmatpush3.msra.mxu0 %v173_v5  ;;  %516 = vmatpush3.msra.mxu1 %v173_v5 }
  0x18   : > { %451 = vmatprep.subr.mxu0 %v172_v6  ;;  %501 = vmatprep.subr.mxu1 %v172_v6 }
  0x19   : > { %452 = vmatpush3.msra.mxu0 %v172_v6  ;;  %517 = vmatpush3.msra.mxu1 %v172_v6 }
  0x1a   : > { %453 = vmatprep.subr.mxu0 %v171_v7  ;;  %502 = vmatprep.subr.mxu1 %v171_v7 }
  0x1b   : > { %454 = vmatpush3.msra.mxu0 %v171_v7  ;;  %518 = vmatpush3.msra.mxu1 %v171_v7 }
  0x1c   : > { %455 = vmatprep.subr.mxu0 %v170_v8  ;;  %503 = vmatprep.subr.mxu1 %v170_v8 }
  0x1d   : > { %456 = vmatpush3.msra.mxu0 %v170_v8  ;;  %519 = vmatpush3.msra.mxu1 %v170_v8 }
  0x1e   : > { %457 = vmatprep.subr.mxu0 %v169_v9  ;;  %504 = vmatprep.subr.mxu1 %v169_v9 }
  0x1f   : > { %458 = vmatpush3.msra.mxu0 %v169_v9  ;;  %520 = vmatpush3.msra.mxu1 %v169_v9 }
  0x20   : > { %459 = vmatprep.subr.mxu0 %v168_v10  ;;  %505 = vmatprep.subr.mxu1 %v168_v10 }
  0x21   : > { %460 = vmatpush3.msra.mxu0 %v168_v10  ;;  %521 = vmatpush3.msra.mxu1 %v168_v10 }
  0x22   : > { %461 = vmatprep.subr.mxu0 %v167_v11  ;;  %506 = vmatprep.subr.mxu1 %v167_v11 }
  0x23   : > { %462 = vmatpush3.msra.mxu0 %v167_v11  ;;  %522 = vmatpush3.msra.mxu1 %v167_v11 }
  0x24   : > { %463 = vmatprep.subr.mxu0 %v166_v12  ;;  %507 = vmatprep.subr.mxu1 %v166_v12 }
  0x25   : > { %464 = vmatpush3.msra.mxu0 %v166_v12  ;;  %523 = vmatpush3.msra.mxu1 %v166_v12 }
  0x26   : > { %465 = vmatprep.subr.mxu0 %v165_v13  ;;  %508 = vmatprep.subr.mxu1 %v165_v13 }
  0x27   : > { %466 = vmatpush3.msra.mxu0 %v165_v13  ;;  %524 = vmatpush3.msra.mxu1 %v165_v13 }
  0x28   : > { %467 = vmatprep.subr.mxu0 %v164_v14  ;;  %509 = vmatprep.subr.mxu1 %v164_v14 }
  0x29   : > { %468 = vmatpush3.msra.mxu0 %v164_v14  ;;  %525 = vmatpush3.msra.mxu1 %v164_v14 }
  0x2a   : > { %469 = vmatprep.subr.mxu0 %v163_v15  ;;  %510 = vmatprep.subr.mxu1 %v163_v15 }
  0x2b   : > { %470 = vmatpush3.msra.mxu0 %v163_v15  ;;  %526 = vmatpush3.msra.mxu1 %v163_v15 }
  0x2c   : > { %471 = vmatprep.mubr.f32.mxu0 %v147_v16  ;;  %483 = vmatprep.mubr.f32.mxu1 %v155_v17 }
  0x2d   : > { %472 = vmatmul.mubr.f32.vlgmr.msra.gmra.mxu0 %v148_v18  ;;  %484 = vmatmul.mubr.f32.vlgmr.msra.gmra.mxu1 %v156_v19 }
  0x2e   : > { %474 = vmatprep.mubr.f32.mxu0 %v149_v20  ;;  %486 = vmatprep.mubr.f32.mxu1 %v157_v21 }
  0x31   : > { %475 = vmatmul.mubr.f32.gmra.mxu0 %v150_v22  ;;  %487 = vmatmul.mubr.f32.gmra.mxu1 %v158_v23 }
  0x32   : > { %477 = vmatprep.mubr.f32.mxu0 %v151_v24  ;;  %489 = vmatprep.mubr.f32.mxu1 %v159_v25 }
  0x35   : > { %478 = vmatmul.mubr.f32.gmra.mxu0 %v152_v26  ;;  %490 = vmatmul.mubr.f32.gmra.mxu1 %v160_v27 }
  0x36   : > { %480 = vmatprep.mubr.f32.mxu0 %v153_v28  ;;  %492 = vmatprep.mubr.f32.mxu1 %v161_v29 }
  0x39   : > { %481 = vmatmul.mubr.f32.gmra.mxu0 %v154_v30  ;;  %493 = vmatmul.mubr.f32.gmra.mxu1 %v162_v31 }
  0xed   : > { %v473_v32 = vpop.f32.mrf.mxu0  ;;  %v485_v33 = vpop.f32.mrf.mxu1 }
  0xee   : > { %325 = vst [vmem:[%s647_s23 + $0x8] sm:$0xff] %v473_v32  ;;  %333 = vst [vmem:[%s647_s23 + $0x48] sm:$0xff] %v485_v33 }
  0xef   : > { %v245_v34 = vpop.f32.mrf.mxu0  ;;  %v285_v35 = vpop.f32.mrf.mxu1 }
  0xf0   : > { %324 = vst [vmem:[%s647_s23] sm:$0xff] %v245_v34  ;;  %332 = vst [vmem:[%s647_s23 + $0x40] sm:$0xff] %v285_v35 }
  0xf1   : > { %v476_v36 = vpop.f32.mrf.mxu0  ;;  %v488_v37 = vpop.f32.mrf.mxu1 }
  0xf2   : > { %327 = vst [vmem:[%s647_s23 + $0x18] sm:$0xff] %v476_v36  ;;  %335 = vst [vmem:[%s647_s23 + $0x58] sm:$0xff] %v488_v37 }
  0xf3   : > { %v255_v38 = vpop.f32.mrf.mxu0  ;;  %v295_v39 = vpop.f32.mrf.mxu1 }
  0xf4   : > { %326 = vst [vmem:[%s647_s23 + $0x10] sm:$0xff] %v255_v38  ;;  %334 = vst [vmem:[%s647_s23 + $0x50] sm:$0xff] %v295_v39 }
  0xf5   : > { %v479_v40 = vpop.f32.mrf.mxu0  ;;  %v491_v41 = vpop.f32.mrf.mxu1 }
  0xf6   : > { %329 = vst [vmem:[%s647_s23 + $0x28] sm:$0xff] %v479_v40  ;;  %337 = vst [vmem:[%s647_s23 + $0x68] sm:$0xff] %v491_v41 }
  0xf7   : > { %v265_v42 = vpop.f32.mrf.mxu0  ;;  %v305_v43 = vpop.f32.mrf.mxu1 }
  0xf8   : > { %328 = vst [vmem:[%s647_s23 + $0x20] sm:$0xff] %v265_v42  ;;  %336 = vst [vmem:[%s647_s23 + $0x60] sm:$0xff] %v305_v43 }
  0xf9   : > { %v482_v44 = vpop.f32.mrf.mxu0  ;;  %v494_v45 = vpop.f32.mrf.mxu1 }
  0xfa   : > { %331 = vst [vmem:[%s647_s23 + $0x38] sm:$0xff] %v482_v44  ;;  %339 = vst [vmem:[%s647_s23 + $0x78] sm:$0xff] %v494_v45 }
  0xfb   : > { %v275_v46 = vpop.f32.mrf.mxu0  ;;  %v315_v47 = vpop.f32.mrf.mxu1 }
  0xfc   : > { %330 = vst [vmem:[%s647_s23 + $0x30] sm:$0xff] %v275_v46  ;;  %338 = vst [vmem:[%s647_s23 + $0x70] sm:$0xff] %v315_v47 }
  0xfd PF: > { %s12_s9 = sadd.s32 1, %s541_s9  }
  0xfe   : > { %p9_p4 = scmp.ge.s32.totalorder %s12_s9, 4  }
 0x100   :  { %11 = sbr.rel (!%p9_p4) target bundleno = 1 (0x1), region = 58 }

// kernel: graph_attention_conv.3
= control target key start
LH: loop header
LB: loop body
LE: loop exit
PB: predicated region body
PF: predicated region fallthrough
CT: control target
= control target key end

     0   :  { %s2974_s0 = inlined_call_operand.vmem [shape: s32[4], index: 0, kind: input, shape index: {}]   ;;  %s2975_s1 = inlined_call_operand.vmem [shape: f32[256,1], index: 1, kind: input, shape index: {}]   ;;  %s2976_s2 = inlined_call_operand.vmem [shape: f32[1,256], index: 2, kind: input, shape index: {}]   ;;  %s2977_s3 = inlined_call_operand.vmem [shape: s8[256,256], index: 3, kind: input, shape index: {}]   ;;  %s2978_s4 = inlined_call_operand.vmem [shape: bf16[256,128], index: 4, kind: input, shape index: {}]   ;;  %s2979_s5 = inlined_call_operand.vmem [shape: f32[256,128], index: 5, kind: output, shape index: {0}]   ;;  %s2980_s6 = inlined_call_operand.hbm [shape: f32[256,1], index: 6, kind: output, shape index: {1}]  }
   0x1   :  { %2990 = sst [smem:[#allocation18_spill]] %s2977_s3  ;;  %s12_s23 = sshll.u32 %s2974_s0, 4  ;;  %s13_s23 = int_to_ptr.vmem [resolvable:$true] %s12_s23 }
   0x2   :  { %s2010_s24 = scalar_lea.vmem %s13_s23, 16  ;;  %p2015_p1 = scmp.lt.s32.totalorder %s13_s23, %s13_s23 }
   0x3   :  { %p2011_p0 = scmp.ne.s32.totalorder %s13_s23, %s2010_s24  ;;  %p2016_p2 = scmp.lt.s32.totalorder %s2010_s24, %s2010_s24 }
   0x5   :  { %p2017_p3 = por %p2016_p2, %p2015_p1 }
   0x7   :  { %p2018_p4 = pnand %p2017_p3, %p2011_p0 }
   0x9   :  { %2021 = shalt.err (!%p2018_p4)  }
   0xa   :  { %s2134_s25 = smov [#allocation4]  }
   0xb   :  { %15 = dma.vmem_to_smem %s13_s23, 16, %s2134_s25, [#allocation3] }
   0xc   :  { %2088 = dma.done.wait [#allocation3], 16 }
   0xd   :  { %2089 = vsyncadd [#allocation3], 4294967280 }
   0xe   :  { %17 = sfence }
   0xf   :  { %18 = vsyncpa [#allocation7], 0 }
  0x10   :  { %20 = vsyncpa [#allocation7 + $0x1], 0  ;;  %s2180_s26 = smov 0   ;;  %s2182_s27 = smov 0  }
  0x11   :  { %s2184_s0 = smov 0   ;;  %s2186_s28 = smov 0  }
  0x12   :  { %s2188_s29 = smov 0   ;;  %s2190_s30 = smov 0  }
  0x13   :  { %s2192_s7 = smov 0   ;;  %s2194_s8 = smov 0  }
  0x14   :  { %s2196_s9 = smov 0   ;;  %s2198_s10 = smov 0  }
  0x15 LB: > { %2991 = sst [smem:[#allocation10_spill]] %s2104_s0  ;;  %s1683_s11 = sadd.s32 4294967295, %s2132_s10   ;;  %s2132_s10 = sphi %s2198_s10, %s26_s10   ;;  %s2128_s9 = sphi %s2196_s9, %s3051_s9   ;;  %s2124_s8 = sphi %s2194_s8, %s3050_s8   ;;  %s2120_s7 = sphi %s2192_s7, %s3049_s7   ;;  %s2116_s30 = sphi %s2190_s30, %s3055_s30   ;;  %s2112_s29 = sphi %s2188_s29, %s3047_s29   ;;  %s2108_s28 = sphi %s2186_s28, %s3046_s28   ;;  %s2104_s0 = sphi %s2184_s0, %s3054_s0   ;;  %s2100_s27 = sphi %s2182_s27, %s3053_s27   ;;  %s2096_s26 = sphi %s2180_s26, %s3052_s26  }
  0x16   : > { %2992 = sst [smem:[#allocation11_spill]] %s2112_s29  ;;  %s1684_s12 = sadd.s32 4294967294, %s2132_s10  }
  0x17   : > { %2993 = sst [smem:[#allocation12_spill]] %s2124_s8  ;;  %s35_s13 = sadd.s32 1, %s2124_s8 }
  0x18   : > { %2994 = sst [smem:[#allocation13_spill]] %s2128_s9  ;;  %s38_s14 = sadd.s32 1, %s2128_s9 }
  0x19   : > { %p36_p5 = scmp.ge.s32.totalorder %s35_s13, 2  ;;  %s99_s15 = sadd.s32 1, %s2112_s29 }
  0x1a   : > { %p106_p6 = scmp.ne.s32.totalorder %s2112_s29, %s2108_s28  ;;  %p107_p7 = scmp.eq.s32.totalorder %s2132_s10, 0 }
  0x1b   : > { %s3057_s13 = smov (%p36_p5, %s35_s13), 0  ;;  %s3059_s14 = smov (!%p36_p5, %s38_s14), %s2128_s9 }
  0x1c   : > { %2995 = sst [smem:[#allocation14_spill]] %s3057_s13  ;;  %s95_s16 = ssub.s32 %s2124_s8, %s3057_s13 }
  0x1d   : > { %p2243_p8 = por %p107_p7, %p106_p6  ;;  %p40_p9 = scmp.ge.s32.totalorder %s3059_s14, 2 }
  0x1e   : > { %s177_s18 = sadd.s32 1, %s2104_s0  ;;  %p187_p10 = scmp.ne.s32.totalorder %s2104_s0, %s2100_s27 }
  0x1f   : > { %p188_p11 = scmp.eq.s32.totalorder %s1683_s11, 3  ;;  %s3061_s14 = smov (%p40_p9, %s3059_s14), 0 }
  0x20   : > { %2997 = sst [smem:[#allocation15_spill]] %s3061_s14  ;;  %p193_p13 = scmp.ne.s32.totalorder %s2100_s27, %s2096_s26 }
  0x21   : > { %p2252_p12 = por %p188_p11, %p187_p10  ;;  %s94_s20 = ssub.s32 %s2128_s9, %s3061_s14 }
  0x22   : > { %p194_p0 = scmp.eq.s32.totalorder %s1684_s12, 3  ;;  %s96_s21 = sor.u32 %s95_s16, %s94_s20 }
  0x23   : > { %p175_p1 = scmp.eq.s32.totalorder %s94_s20, 0  ;;  %p97_p2 = scmp.eq.s32.totalorder %s96_s21, 0 }
  0x24   : > { %p2260_p3 = por %p194_p0, %p193_p13  ;;  %p1686_p4 = scmp.ge.s32.totalorder %s2132_s10, 4 }
  0x25   : > { %s2265_s23 = scalar_select %p175_p1, %s2104_s0, %s177_s18  }
  0x26   : > { %s2268_s24 = scalar_select %p97_p2, %s2112_s29, %s99_s15  }
  0x27   : > { %3000 = sst [smem:[#allocation16_spill]] %s2265_s23  ;;  %210 = sbr.rel (%p1686_p4) target bundleno = 56 (0x38), region = 16 }
  0x28   : > { %3001 = sst [smem:[#allocation17_spill]] %s2268_s24 }
  0x2c   : > { %228 = sbr.rel (!%p2243_p8) target bundleno = 56 (0x38), region = 28  ;;  %s230_s25 = sand.u32 (%p2243_p8), 1, %s2112_s29  }
  0x2d   : > { %s1742_s11 = sshll.u32 (%p2243_p8), %s2128_s9, 3  ;;  %s1687_s12 = sshll.u32 (%p2243_p8), %s230_s25, 5 }
  0x2e   : > { %s235_s16 = sadd.s32 (%p2243_p8), %s2124_s8, %s1742_s11  ;;  %s3002_s3 = sld [smem:[#allocation18_spill]] (%p2243_p8) }
  0x2f   : > { %s1690_s20 = sshll.u32 (%p2243_p8), %s235_s16, 3  ;;  %s232_s15 = scalar_lea.vmem (%p2243_p8), [#allocation5], %s1687_s12 }
  0x34   : > { %s237_s18 = scalar_lea.vmem %s3002_s3, %s1690_s20 }
  0x35   : > { %v272_v0 = vld [vmem:[%s237_s18] sm:$0xff]  ;;  %v274_v1 = vld [vmem:[%s237_s18 + $0x10] sm:$0xff] }
  0x36   : > { %v276_v2 = vld [vmem:[%s237_s18 + $0x20] sm:$0xff]  ;;  %273 = vst [vmem:[%s232_s15] sm:$0xff] %v272_v0  ;;  %275 = vst [vmem:[%s232_s15 + $0x8] sm:$0xff] %v274_v1  ;;  %v278_v3 = vld [vmem:[%s237_s18 + $0x30] sm:$0xff] }
  0x37   : > { %277 = vst [vmem:[%s232_s15 + $0x10] sm:$0xff] %v276_v2  ;;  %279 = vst [vmem:[%s232_s15 + $0x18] sm:$0xff] %v278_v3 }
  0x38 PF: > { %p1691_p5 = scmp.ge.s32.totalorder %s2132_s10, 1  ;;  %p293_p6 = scmp.lt.s32.totalorder %s2132_s10, 5 }
  0x3a   : > { %p294_p7 = pnand %p1691_p5, %p293_p6 }
  0x3b   : > { %s300_s14 = sand.u32 (!%p294_p7), 1, %s2108_s28   ;;  %s2983_s17 = sand.u32 (!%p294_p7), 1, %s2100_s27  }
  0x3c   : > { %297 = sbr.rel (%p294_p7) target bundleno = 967 (0x3c7), region = 70  ;;  %s1692_s25 = sshll.u32 (!%p294_p7), %s300_s14, 5 }
  0x3d   : > { %s1693_s11 = sshll.u32 (!%p294_p7), %s2983_s17, 7  ;;  %s1694_s12 = sshll.u32 (!%p294_p7), %s2120_s7, 4 }
  0x3e   : > { %p351_p8 = scmp.lt.s32.totalorder (!%p294_p7), %s2116_s30, 1  ;;  %p346_p9 = scmp.lt.s32.totalorder (!%p294_p7), %s1694_s12, 31 }
  0x3f   : > { %s1696_s16 = sshll.u32 (!%p294_p7), %s2116_s30, 4  ;;  %s2310_s21 = scalar_lea.vmem (!%p294_p7), [#allocation5], %s1692_s25 }
  0x40   : > { %p356_p10 = scmp.lt.s32.totalorder (!%p294_p7), %s1696_s16, 31  ;;  %p1700_p11 = scmp.ne.s32.totalorder (!%p294_p7), %s2116_s30, 0 }
  0x41   : > { %s2289_s20 = scalar_select %p351_p8, %s2116_s30, 1 }
  0x42   : > { %s3063_s12 = smov (!%p346_p9, %s1694_s12), 31  ;;  %s3065_s16 = smov (!%p356_p10, %s1696_s16), 31 }
  0x43   : > { %s353_s15 = scalar_lea.vmem %s2976_s2, %s2289_s20  ;;  %s1695_s3 = sshll.u32 %s3063_s12, 3 }
  0x44   : > { %s2298_s14 = scalar_lea.vmem %s2975_s1, %s1695_s3  ;;  %s2303_s8 = scalar_lea.vmem %s2979_s5, %s1695_s3 }
  0x45   : > { %s1697_s24 = sshll.u32 %s3065_s16, 2  ;;  %s2312_s12 = scalar_lea.vmem [#allocation6], %s1693_s11 }
  0x46   : > { %s2308_s0 = scalar_lea.vmem %s2978_s4, %s1697_s24  ;;  %374 = sbr.rel (%p1700_p11) target bundleno = 92 (0x5c), region = 78 }
  0x4b   : > { %vm375_vm0 = vcmask 7168   ;;  %v2135_v4 = vmov -1e+30   ;;  %v2136_v5 = vmov 0.0  }
  0x4c   : > { %376 = vst.msk [vmem:[#allocation2] sm:$0xff] %vm375_vm0, %v2135_v4  ;;  %377 = vst.msk [vmem:[#allocation2 + $0x8] sm:$0xff] %vm375_vm0, %v2135_v4 }
  0x4d   : > { %378 = vst.msk [vmem:[#allocation2 + $0x10] sm:$0xff] %vm375_vm0, %v2135_v4  ;;  %379 = vst.msk [vmem:[#allocation2 + $0x18] sm:$0xff] %vm375_vm0, %v2135_v4 }
  0x4e   : > { %380 = vst.msk [vmem:[#allocation2 + $0x20] sm:$0xff] %vm375_vm0, %v2135_v4  ;;  %381 = vst.msk [vmem:[#allocation2 + $0x28] sm:$0xff] %vm375_vm0, %v2135_v4 }
  0x4f   : > { %382 = vst.msk [vmem:[#allocation2 + $0x30] sm:$0xff] %vm375_vm0, %v2135_v4  ;;  %383 = vst.msk [vmem:[#allocation2 + $0x38] sm:$0xff] %vm375_vm0, %v2135_v4 }
  0x50   : > { %384 = vst.msk [vmem:[#allocation2 + $0x40] sm:$0xff] %vm375_vm0, %v2135_v4  ;;  %385 = vst.msk [vmem:[#allocation2 + $0x48] sm:$0xff] %vm375_vm0, %v2135_v4 }
  0x51   : > { %386 = vst.msk [vmem:[#allocation2 + $0x50] sm:$0xff] %vm375_vm0, %v2135_v4  ;;  %387 = vst.msk [vmem:[#allocation2 + $0x58] sm:$0xff] %vm375_vm0, %v2135_v4 }
  0x52   : > { %388 = vst.msk [vmem:[#allocation2 + $0x60] sm:$0xff] %vm375_vm0, %v2135_v4  ;;  %389 = vst.msk [vmem:[#allocation2 + $0x68] sm:$0xff] %vm375_vm0, %v2135_v4 }
  0x53   : > { %390 = vst.msk [vmem:[#allocation2 + $0x70] sm:$0xff] %vm375_vm0, %v2135_v4  ;;  %391 = vst.msk [vmem:[#allocation2 + $0x78] sm:$0xff] %vm375_vm0, %v2135_v4 }
  0x54   : > { %392 = vst [vmem:[%s2303_s8] sm:$0xff] %v2136_v5  ;;  %393 = vst [vmem:[%s2303_s8 + $0x8] sm:$0xff] %v2136_v5 }
  0x55   : > { %394 = vst [vmem:[%s2303_s8 + $0x10] sm:$0xff] %v2136_v5  ;;  %395 = vst [vmem:[%s2303_s8 + $0x18] sm:$0xff] %v2136_v5 }
  0x56   : > { %396 = vst [vmem:[%s2303_s8 + $0x20] sm:$0xff] %v2136_v5  ;;  %397 = vst [vmem:[%s2303_s8 + $0x28] sm:$0xff] %v2136_v5 }
  0x57   : > { %398 = vst [vmem:[%s2303_s8 + $0x30] sm:$0xff] %v2136_v5  ;;  %399 = vst [vmem:[%s2303_s8 + $0x38] sm:$0xff] %v2136_v5 }
  0x58   : > { %400 = vst [vmem:[%s2303_s8 + $0x40] sm:$0xff] %v2136_v5  ;;  %401 = vst [vmem:[%s2303_s8 + $0x48] sm:$0xff] %v2136_v5 }
  0x59   : > { %402 = vst [vmem:[%s2303_s8 + $0x50] sm:$0xff] %v2136_v5  ;;  %403 = vst [vmem:[%s2303_s8 + $0x58] sm:$0xff] %v2136_v5 }
  0x5a   : > { %404 = vst [vmem:[%s2303_s8 + $0x60] sm:$0xff] %v2136_v5  ;;  %405 = vst [vmem:[%s2303_s8 + $0x68] sm:$0xff] %v2136_v5 }
  0x5b   : > { %406 = vst [vmem:[%s2303_s8 + $0x70] sm:$0xff] %v2136_v5  ;;  %407 = vst [vmem:[%s2303_s8 + $0x78] sm:$0xff] %v2136_v5 }
  0x5c PF: > { %s1701_s3 = sshll.u32 %s2120_s7, 1 }
  0x5d   : > { %s409_s29 = sadd.s32 %s2116_s30, %s1701_s3 }
  0x5e   : > { %s410_s9 = sld [smem:[#allocation4 + %s409_s29]] }
  0x64   : > { %p1702_p13 = scmp.le.s32.totalorder %s410_s9, 0 }
  0x66   : > { %414 = sbr.rel (%p1702_p13) target bundleno = 758 (0x2f6), region = 82 }
  0x6b   : > { %v423_v6 = vld [vmem:[%s2298_s14 + $0x40] sm:$0xff]  ;;  %v2137_v8 = vmov 0   ;;  %v424_v9 = vld [vmem:[%s2298_s14 + $0x48] sm:$0xff]  ;;  %v418_v11 = vld [vmem:[%s2298_s14 + $0x18] sm:$0xff] }
  0x6c   : > { %v415_v7 = vld [vmem:[%s2298_s14] sm:$0xff]  ;;  %1903 = vset.pattern.permute.xlu1 %v2137_v8  ;;  %1902 = vset.pattern.permute.xlu0 %v2137_v8  ;;  %v416_v10 = vld [vmem:[%s2298_s14 + $0x8] sm:$0xff]  ;;  %v417_v12 = vld [vmem:[%s2298_s14 + $0x10] sm:$0xff] }
  0x6d   : > { %474 = vperm.xlu1 %1903, %v423_v6   ;;  %434 = vperm.xlu0 %1902, %v415_v7   ;;  %v426_v13 = vld [vmem:[%s2298_s14 + $0x58] sm:$0xff]  ;;  %v425_v14 = vld [vmem:[%s2298_s14 + $0x50] sm:$0xff]  ;;  %v420_v15 = vld [vmem:[%s2298_s14 + $0x28] sm:$0xff] }
  0x6e   : > { %v419_v16 = vld [vmem:[%s2298_s14 + $0x20] sm:$0xff]  ;;  %v428_v17 = vld [vmem:[%s2298_s14 + $0x68] sm:$0xff]  ;;  %v422_v19 = vld [vmem:[%s2298_s14 + $0x38] sm:$0xff] }
  0x6f   : > { %v427_v18 = vld [vmem:[%s2298_s14 + $0x60] sm:$0xff]  ;;  %v421_v20 = vld [vmem:[%s2298_s14 + $0x30] sm:$0xff]  ;;  %v430_v21 = vld [vmem:[%s2298_s14 + $0x78] sm:$0xff] }
  0x70   : > { %v429_v22 = vld [vmem:[%s2298_s14 + $0x70] sm:$0xff]  ;;  %v566_v23 = vld [vmem:[%s2310_s21] sm:$0xff]  ;;  %v567_v42 = vld [vmem:[%s2310_s21 + $0x8] sm:$0xff] }
  0x71   : > { %479 = vperm.xlu1 %1903, %v424_v9   ;;  %439 = vperm.xlu0 %1902, %v416_v10   ;;  %vm570_vm1 = vnez %v566_v23  ;;  %v568_v24 = vld [vmem:[%s2310_s21 + $0x10] sm:$0xff]  ;;  %vm571_vm5 = vnez %v567_v42  ;;  %v569_v53 = vld [vmem:[%s2310_s21 + $0x18] sm:$0xff]  ;;  %v2387_v62 = vld [vmem:[%s353_s15] ss:$0 sm:$0xff] }
  0x72   : > { %v574_v25 = vsel %vm570_vm1, 16843009, %v2137_v8  ;;  %vm572_vm2 = vnez %v568_v24  ;;  %v2375_v52 = vsel %vm571_vm5, 16843009, %v2137_v8  ;;  %vm573_vm10 = vnez %v569_v53 }
  0x73   : > { %v578_v26 = vunpack.c.0.s8 %v574_v25  ;;  %v576_v27 = vsel %vm572_vm2, 16843009, %v2137_v8  ;;  %v579_v28 = vunpack.c.1.s8 %v574_v25  ;;  %v580_v33 = vunpack.c.2.s8 %v574_v25 }
  0x74   : > { %v586_v29 = vunpack.c.0.s8 %v576_v27  ;;  %v587_v32 = vunpack.c.1.s8 %v576_v27  ;;  %v581_v35 = vunpack.c.3.s8 %v574_v25  ;;  %v588_v40 = vunpack.c.2.s8 %v576_v27 }
  0x75   : > { %449 = vperm.xlu1 %1903, %v418_v11   ;;  %444 = vperm.xlu0 %1902, %v417_v12   ;;  %v594_v30 = vpack.c.b16 %v578_v26, %v578_v26  ;;  %v596_v31 = vpack.c.b16 %v579_v28, %v579_v28  ;;  %v598_v39 = vpack.c.b16 %v580_v33, %v580_v33  ;;  %v589_v41 = vunpack.c.3.s8 %v576_v27 }
  0x76   : > { %v610_v34 = vpack.c.b16 %v586_v29, %v586_v29  ;;  %v612_v38 = vpack.c.b16 %v587_v32, %v587_v32  ;;  %v600_v44 = vpack.c.b16 %v581_v35, %v581_v35  ;;  %v614_v47 = vpack.c.b16 %v588_v40, %v588_v40 }
  0x77   : > { %v595_v36 = vpack.c.b8 %v594_v30, %v594_v30  ;;  %v597_v37 = vpack.c.b8 %v596_v31, %v596_v31  ;;  %v599_v46 = vpack.c.b8 %v598_v39, %v598_v39  ;;  %v616_v48 = vpack.c.b16 %v589_v41, %v589_v41 }
  0x78   : > { %v611_v43 = vpack.c.b8 %v610_v34, %v610_v34  ;;  %v613_v45 = vpack.c.b8 %v612_v38, %v612_v38  ;;  %v601_v51 = vpack.c.b8 %v600_v44, %v600_v44  ;;  %v615_v54 = vpack.c.b8 %v614_v47, %v614_v47 }
  0x79   : > { %489 = vperm.xlu1 %1903, %v426_v13   ;;  %484 = vperm.xlu0 %1902, %v425_v14   ;;  %vm626_vm3 = vnez %v595_v36  ;;  %vm627_vm4 = vnez %v597_v37  ;;  %vm628_vm8 = vnez %v599_v46  ;;  %v617_v58 = vpack.c.b8 %v616_v48, %v616_v48 }
  0x7a   : > { %v642_v49 = vsel %vm626_vm3, 16843009, %v2137_v8  ;;  %vm634_vm6 = vnez %v611_v43  ;;  %v643_v50 = vsel %vm627_vm4, 16843009, %v2137_v8  ;;  %vm635_vm7 = vnez %v613_v45 }
  0x7b   : > { %v658_v55 = vunpack.c.0.s8 %v642_v49  ;;  %v650_v56 = vsel %vm634_vm6, 16843009, %v2137_v8  ;;  %v659_v57 = vunpack.c.0.s8 %v643_v50  ;;  %v651_v59 = vsel %vm635_vm7, 16843009, %v2137_v8 }
  0x7c   : > { %vm629_vm9 = vnez %v601_v51  ;;  %v582_v60 = vunpack.c.0.s8 %v2375_v52  ;;  %v583_v61 = vunpack.c.1.s8 %v2375_v52  ;;  %v666_v63 = vunpack.c.0.s8 %v650_v56 }
  0x7d   : > { %459 = vperm.xlu1 %1903, %v420_v15   ;;  %454 = vperm.xlu0 %1902, %v419_v16   ;;  %v644_v0 = vsel %vm628_vm8, 16843009, %v2137_v8  ;;  %vm636_vm11 = vnez %v615_v54  ;;  %vm2390_vm12 = vcmp.ne.s32.totalorder %v658_v55, 0  ;;  %v667_v2 = vunpack.c.0.s8 %v651_v59 }
  0x7e   : > { %v645_v3 = vsel %vm629_vm9, 16843009, %v2137_v8  ;;  %v2396_v4 = vsel %vm573_vm10, 16843009, %v2137_v8  ;;  %vm2398_vm13 = vcmp.ne.s32.totalorder %v659_v57, 0  ;;  %vm637_vm14 = vnez %v617_v58 }
  0x7f   : > { %v602_v9 = vpack.c.b16 %v582_v60, %v582_v60  ;;  %v584_v10 = vunpack.c.2.s8 %v2375_v52  ;;  %v652_v13 = vsel %vm636_vm11, 16843009, %v2137_v8  ;;  %v604_v14 = vpack.c.b16 %v583_v61, %v583_v61 }
  0x80   : > { %vm2406_vm15 = vcmp.ne.s32.totalorder %v666_v63, 0  ;;  %v660_v16 = vunpack.c.0.s8 %v644_v0  ;;  %vm2411_vm0 = vcmp.ne.s32.totalorder %v667_v2, 0  ;;  %v591_v23 = vunpack.c.1.s8 %v2396_v4 }
  0x81   : > { %499 = vperm.xlu1 %1903, %v428_v17   ;;  %494 = vperm.xlu0 %1902, %v427_v18   ;;  %v661_v17 = vunpack.c.0.s8 %v645_v3  ;;  %v590_v18 = vunpack.c.0.s8 %v2396_v4  ;;  %v668_v26 = vunpack.c.0.s8 %v652_v13  ;;  %v603_v27 = vpack.c.b8 %v602_v9, %v602_v9 }
  0x82   : > { %v606_v28 = vpack.c.b16 %v584_v10, %v584_v10  ;;  %v585_v29 = vunpack.c.3.s8 %v2375_v52  ;;  %v605_v33 = vpack.c.b8 %v604_v14, %v604_v14  ;;  %vm2420_vm1 = vcmp.ne.s32.totalorder %v660_v16, 0 }
  0x83   : > { %v618_v37 = vpack.c.b16 %v590_v18, %v590_v18  ;;  %vm2428_vm2 = vcmp.ne.s32.totalorder %v661_v17, 0  ;;  %v620_v42 = vpack.c.b16 %v591_v23, %v591_v23  ;;  %vm2433_vm3 = vcmp.ne.s32.totalorder %v668_v26, 0 }
  0x84   : > { %vm2437_vm4 = vnez %v603_v27  ;;  %v607_v47 = vpack.c.b8 %v606_v28, %v606_v28  ;;  %v608_v48 = vpack.c.b16 %v585_v29, %v585_v29  ;;  %vm631_vm5 = vnez %v605_v33 }
  0x85   : > { %469 = vperm.xlu1 %1903, %v422_v19   ;;  %464 = vperm.xlu0 %1902, %v421_v20   ;;  %v619_v54 = vpack.c.b8 %v618_v37, %v618_v37  ;;  %v592_v55 = vunpack.c.2.s8 %v2396_v4  ;;  %v621_v60 = vpack.c.b8 %v620_v42, %v620_v42  ;;  %v646_v0 = vsel %vm2437_vm4, 16843009, %v2137_v8 }
  0x86   : > { %v647_v2 = vsel %vm631_vm5, 16843009, %v2137_v8  ;;  %v609_v3 = vpack.c.b8 %v608_v48, %v608_v48  ;;  %vm632_vm7 = vnez %v607_v47 }
  0x87   : > { %vm2469_vm8 = vnez %v619_v54  ;;  %v622_v14 = vpack.c.b16 %v592_v55, %v592_v55  ;;  %vm639_vm9 = vnez %v621_v60  ;;  %v648_v23 = vsel %vm632_vm7, 16843009, %v2137_v8 }
  0x88   : > { %v654_v28 = vsel %vm2469_vm8, 16843009, %v2137_v8 }
  0x89   : > { %509 = vperm.xlu1 %1903, %v430_v21   ;;  %504 = vperm.xlu0 %1902, %v429_v22   ;;  %v653_v22 = vsel %vm637_vm14, 16843009, %v2137_v8  ;;  %vm2504_vm14 = vnez %v609_v3 }
  0x8a   : > { %v669_v36 = vunpack.c.0.s8 %v653_v22  ;;  %v663_v22 = vunpack.c.0.s8 %v647_v2 }
  0x8c   : > { %vm2452_vm6 = vcmp.ne.s32.totalorder %v669_v36, 0  ;;  %vm2500_vm11 = vcmp.ne.s32.totalorder %v663_v22, 0 }
  0xe8   : > { %v475_v5 = vpop.permute.xlu1 %474  ;;  %v435_v6 = vpop.permute.xlu0 %434 }
  0xe9   : > { %v526_v11 = vadd.f32 %v2387_v62, %v475_v5  ;;  %v518_v12 = vadd.f32 %v2387_v62, %v435_v6  ;;  %v593_v5 = vunpack.c.3.s8 %v2396_v4 }
  0xeb   : > { %v542_v19 = vmul.f32 0.01, %v526_v11  ;;  %v534_v20 = vmul.f32 0.01, %v518_v12 }
  0xec   : > { %v480_v24 = vpop.permute.xlu1 %479  ;;  %v440_v25 = vpop.permute.xlu0 %439 }
  0xed   : > { %v527_v30 = vadd.f32 %v2387_v62, %v480_v24  ;;  %v519_v31 = vadd.f32 %v2387_v62, %v440_v25  ;;  %v550_v32 = vmax.f32 %v518_v12, %v534_v20  ;;  %v558_v34 = vmax.f32 %v526_v11, %v542_v19 }
  0xee   : > { %v662_v20 = vunpack.c.0.s8 %v646_v0  ;;  %v624_v24 = vpack.c.b16 %v593_v5, %v593_v5  ;;  %v649_v0 = vsel %vm2504_vm14, 16843009, %v2137_v8 }
  0xef   : > { %v543_v38 = vmul.f32 0.01, %v527_v30  ;;  %v535_v39 = vmul.f32 0.01, %v519_v31  ;;  %v2426_v40 = vsel %vm2390_vm12, %v550_v32, -1e+30  ;;  %v623_v32 = vpack.c.b8 %v622_v14, %v622_v14 }
  0xf0   : > { %v450_v43 = vpop.permute.xlu1 %449  ;;  %722 = vmax.xlane.f32.xlu0 %v2426_v40  ;;  %v445_v44 = vpop.permute.xlu0 %444  ;;  %v2445_v52 = vsel %vm2406_vm15, %v558_v34, -1e+30  ;;  %vm2496_vm10 = vcmp.ne.s32.totalorder %v662_v20, 0  ;;  %v665_v20 = vunpack.c.0.s8 %v649_v0 }
  0xf1   : > { %v521_v49 = vadd.f32 %v2387_v62, %v450_v43  ;;  %v520_v50 = vadd.f32 %v2387_v62, %v445_v44  ;;  %v551_v51 = vmax.f32 %v519_v31, %v535_v39  ;;  %v559_v53 = vmax.f32 %v527_v30, %v543_v38 }
  0xf2   : > { %v655_v31 = vsel %vm639_vm9, 16843009, %v2137_v8  ;;  %v670_v43 = vunpack.c.0.s8 %v654_v28  ;;  %vm640_vm4 = vnez %v623_v32  ;;  %vm2561_vm14 = vcmp.ne.s32.totalorder %v665_v20, 0  ;;  %v1907_v20 = vld [vmem:[%s2308_s0 + $0x20] sm:$0xff]  }
  0xf3   : > { %v537_v56 = vmul.f32 0.01, %v521_v49  ;;  %v536_v57 = vmul.f32 0.01, %v520_v50  ;;  %v2450_v58 = vsel %vm2398_vm13, %v551_v51, -1e+30 }
  0xf4   : > { %v490_v61 = vpop.permute.xlu1 %489  ;;  %738 = vmax.xlane.f32.xlu0 %v2445_v52  ;;  %724 = vmax.xlane.f32.xlu1 %v2450_v58  ;;  %v485_v63 = vpop.permute.xlu0 %484  ;;  %v2467_v11 = vsel %vm2411_vm0, %v559_v53, -1e+30  ;;  %v625_v53 = vpack.c.b8 %v624_v24, %v624_v24  ;;  %vm2520_vm5 = vcmp.ne.s32.totalorder %v670_v43, 0  ;;  %v3039_v44 = vmov 0 }
  0xf5   : > { %v529_v6 = vadd.f32 %v2387_v62, %v490_v61  ;;  %v528_v9 = vadd.f32 %v2387_v62, %v485_v63  ;;  %v552_v10 = vmax.f32 %v520_v50, %v536_v57  ;;  %v553_v12 = vmax.f32 %v521_v49, %v537_v56 }
  0xf6   : > { %v671_v49 = vunpack.c.0.s8 %v655_v31  ;;  %v664_v63 = vunpack.c.0.s8 %v648_v23  ;;  %vm641_vm8 = vnez %v625_v53  ;;  %v2589_v53 = vld [vmem:[#allocation2 + $0x8] sm:$0xff] }
  0xf7   : > { %v545_v16 = vmul.f32 0.01, %v529_v6  ;;  %v544_v17 = vmul.f32 0.01, %v528_v9  ;;  %v2475_v4 = vsel %vm2420_vm1, %v552_v10, -1e+30 }
  0xf8   : > { %v460_v18 = vpop.permute.xlu1 %459  ;;  %740 = vmax.xlane.f32.xlu0 %v2467_v11  ;;  %726 = vmax.xlane.f32.xlu1 %v2475_v4  ;;  %v455_v19 = vpop.permute.xlu0 %454  ;;  %v2487_v29 = vsel %vm2428_vm2, %v553_v12, -1e+30  ;;  %vm2534_vm7 = vcmp.ne.s32.totalorder %v671_v49, 0  ;;  %vm2544_vm9 = vcmp.ne.s32.totalorder %v664_v63, 0 }
  0xf9   : > { %v523_v25 = vadd.f32 %v2387_v62, %v460_v18  ;;  %v522_v26 = vadd.f32 %v2387_v62, %v455_v19  ;;  %v560_v27 = vmax.f32 %v528_v9, %v544_v17  ;;  %v561_v30 = vmax.f32 %v529_v6, %v545_v16 }
  0xfa   : > { %v656_v6 = vsel %vm640_vm4, 16843009, %v2137_v8 }
  0xfb   : > { %v539_v33 = vmul.f32 0.01, %v523_v25  ;;  %v538_v34 = vmul.f32 0.01, %v522_v26  ;;  %v2492_v36 = vsel %vm2433_vm3, %v560_v27, -1e+30  ;;  %v672_v22 = vunpack.c.0.s8 %v656_v6 }
  0xfc   : > { %v500_v37 = vpop.permute.xlu1 %499  ;;  %728 = vmax.xlane.f32.xlu0 %v2487_v29  ;;  %742 = vmax.xlane.f32.xlu1 %v2492_v36  ;;  %v495_v38 = vpop.permute.xlu0 %494  ;;  %v2512_v50 = vsel %vm2452_vm6, %v561_v30, -1e+30 }
  0xfd   : > { %v531_v46 = vadd.f32 %v2387_v62, %v500_v37  ;;  %v530_v47 = vadd.f32 %v2387_v62, %v495_v38  ;;  %v554_v48 = vmax.f32 %v522_v26, %v538_v34  ;;  %v555_v51 = vmax.f32 %v523_v25, %v539_v33 }
  0xfe   : > { %v657_v26 = vsel %vm641_vm8, 16843009, %v2137_v8  ;;  %vm2565_vm4 = vcmp.ne.s32.totalorder %v672_v22, 0  ;;  %v3037_v8 = vmov 0 }
  0xff   : > { %v547_v54 = vmul.f32 0.01, %v531_v46  ;;  %v546_v55 = vmul.f32 0.01, %v530_v47  ;;  %v2516_v56 = vsel %vm2496_vm10, %v554_v48, -1e+30  ;;  %v673_v33 = vunpack.c.0.s8 %v657_v26 }
 0x100   : > { %v470_v57 = vpop.permute.xlu1 %469  ;;  %744 = vmax.xlane.f32.xlu0 %v2512_v50  ;;  %730 = vmax.xlane.f32.xlu1 %v2516_v56  ;;  %v465_v60 = vpop.permute.xlu0 %464  ;;  %v2532_v9 = vsel %vm2500_vm11, %v555_v51, -1e+30  ;;  %v3038_v8 = vsel %vm2565_vm4, 4294967295, %v3037_v8  ;;  %v1904_v48 = vld [vmem:[%s2308_s0 + $0x38] sm:$0xff]  }
 0x101   : > { %v525_v2 = vadd.f32 %v2387_v62, %v470_v57  ;;  %v524_v3 = vadd.f32 %v2387_v62, %v465_v60  ;;  %v562_v5 = vmax.f32 %v530_v47, %v546_v55  ;;  %v563_v10 = vmax.f32 %v531_v46, %v547_v54  ;;  %v706_v47 = vld [vmem:[#allocation2] sm:$0xff]  ;;  %1760 = vmatprep.subr.bf16.mxu0 %v1904_v48  ;;  %v1905_v55 = vld [vmem:[%s2308_s0 + $0x30] sm:$0xff]  }
 0x102   : > { %vm2579_vm8 = vcmp.ne.s32.totalorder %v673_v33, 0  ;;  %1792 = vmatprep.subr.bf16.mxu1 %v1904_v48  ;;  %1761 = vmatpush3.bf16.msra.mxu0 %v1904_v48  ;;  %v2591_v54 = vld [vmem:[#allocation2 + $0x40] sm:$0xff] }
 0x103   : > { %v541_v13 = vmul.f32 0.01, %v525_v2  ;;  %v540_v14 = vmul.f32 0.01, %v524_v3  ;;  %v2540_v16 = vsel %vm2520_vm5, %v562_v5, -1e+30  ;;  %1800 = vmatpush3.bf16.msra.mxu1 %v1904_v48  ;;  %1762 = vmatprep.subr.bf16.mxu0 %v1905_v55 }
 0x104   : > { %v510_v17 = vpop.permute.xlu1 %509  ;;  %732 = vmax.xlane.f32.xlu0 %v2532_v9  ;;  %746 = vmax.xlane.f32.xlu1 %v2540_v16  ;;  %v505_v18 = vpop.permute.xlu0 %504  ;;  %v2553_v27 = vsel %vm2534_vm7, %v563_v10, -1e+30  ;;  %v3040_v44 = vsel %vm2579_vm8, 4294967295, %v3039_v44  ;;  %v1906_v5 = vld [vmem:[%s2308_s0 + $0x28] sm:$0xff]  }
 0x105   : > { %v533_v23 = vadd.f32 %v2387_v62, %v510_v17  ;;  %v532_v24 = vadd.f32 %v2387_v62, %v505_v18  ;;  %v556_v25 = vmax.f32 %v524_v3, %v540_v14  ;;  %v557_v32 = vmax.f32 %v525_v2, %v541_v13  ;;  %1793 = vmatprep.subr.bf16.mxu1 %v1905_v55  ;;  %v2599_v2 = vld [vmem:[#allocation2 + $0x10] sm:$0xff]  ;;  %v2601_v3 = vld [vmem:[#allocation2 + $0x48] sm:$0xff]  ;;  %v709_v18 = vld [vmem:[#allocation2 + $0x18] sm:$0xff] }
 0x106   : > { %1763 = vmatpush3.bf16.msra.mxu0 %v1905_v55  ;;  %v2612_v17 = vld [vmem:[#allocation2 + $0x50] sm:$0xff] }
 0x107   : > { %v549_v28 = vmul.f32 0.01, %v533_v23  ;;  %v548_v30 = vmul.f32 0.01, %v532_v24  ;;  %v2557_v31 = vsel %vm2544_vm9, %v556_v25, -1e+30  ;;  %1801 = vmatpush3.bf16.msra.mxu1 %v1905_v55  ;;  %1764 = vmatprep.subr.bf16.mxu0 %v1906_v5 }
 0x108   : > { %748 = vmax.xlane.f32.xlu0 %v2553_v27  ;;  %734 = vmax.xlane.f32.xlu1 %v2557_v31  ;;  %v2571_v37 = vsel %vm2561_vm14, %v557_v32, -1e+30  ;;  %v1908_v32 = vld [vmem:[%s2308_s0 + $0x18] sm:$0xff]   ;;  %v2634_v55 = vld [vmem:[#allocation2 + $0x60] sm:$0xff] }
 0x109   : > { %v564_v34 = vmax.f32 %v532_v24, %v548_v30  ;;  %v565_v43 = vmax.f32 %v533_v23, %v549_v28  ;;  %1794 = vmatprep.subr.bf16.mxu1 %v1906_v5  ;;  %v710_v28 = vld [vmem:[#allocation2 + $0x20] sm:$0xff]  ;;  %v2622_v30 = vld [vmem:[#allocation2 + $0x58] sm:$0xff] }
 0x10a   : > { %1765 = vmatpush3.bf16.msra.mxu0 %v1906_v5 }
 0x10b   : > { %v2575_v38 = vsel %vm2565_vm4, %v564_v34, -1e+30  ;;  %v2585_v46 = vsel %vm2579_vm8, %v565_v43, -1e+30  ;;  %vm1275_vm4 = vcmask 7168   ;;  %1802 = vmatpush3.bf16.msra.mxu1 %v1906_v5  ;;  %1766 = vmatprep.subr.bf16.mxu0 %v1907_v20  ;;  %vm1724_vm8 = vmpackc.low %vm2411_vm0, %vm2406_vm15 }
 0x10c   : > { %736 = vmax.xlane.f32.xlu0 %v2571_v37  ;;  %750 = vmax.xlane.f32.xlu1 %v2575_v38  ;;  %vm1718_vm15 = vmpackc.low %vm2500_vm11, %vm2496_vm10 }
 0x10d   : > { %1795 = vmatprep.subr.bf16.mxu1 %v1907_v20  ;;  %vm1730_vm0 = vmpackc.low %vm2534_vm7, %vm2520_vm5 }
 0x10e   : > { %1767 = vmatpush3.bf16.msra.mxu0 %v1907_v20 }
 0x10f   : > { %1803 = vmatpush3.bf16.msra.mxu1 %v1907_v20  ;;  %1768 = vmatprep.subr.bf16.mxu0 %v1908_v32 }
 0x110   : > { %752 = vmax.xlane.f32.xlu0 %v2585_v46  ;;  %1796 = vmatprep.subr.bf16.mxu1 %v1908_v32 }
 0x112   : > { %1769 = vmatpush3.bf16.msra.mxu0 %v1908_v32 }
 0x113   : > { %1804 = vmatpush3.bf16.msra.mxu1 %v1908_v32 }
 0x179   : > { %v723_v49 = vpop.xlane.xlu0 %722 }
 0x17a   : > { %v754_v51 = vmax.f32 %v706_v47, %v723_v49 }
 0x17c   : > { %1276 = vst.msk [vmem:[#allocation2] sm:$0xff] %vm1275_vm4, %v754_v51  ;;  %820 = vperm.xlu1 %1903, %v754_v51   ;;  %v770_v22 = vsub.f32 %v706_v47, %v754_v51 }
 0x17d   : > { %v725_v57 = vpop.xlane.xlu1 %724  ;;  %v739_v60 = vpop.xlane.xlu0 %738 }
 0x17e   : > { %v755_v63 = vmax.f32 %v2589_v53, %v725_v57  ;;  %v2597_v0 = vmax.f32 %v2591_v54, %v739_v60  ;;  %v786_v33 = vmul.f32 1.442695, %v770_v22  ;;  %v711_v57 = vld [vmem:[#allocation2 + $0x28] sm:$0xff]  ;;  %v1909_v60 = vld [vmem:[%s2308_s0 + $0x10] sm:$0xff]  }
 0x17f   : > { %1770 = vmatprep.subr.bf16.mxu0 %v1909_v60  ;;  %1797 = vmatprep.subr.bf16.mxu1 %v1909_v60  ;;  %v712_v22 = vld [vmem:[#allocation2 + $0x30] sm:$0xff] }
 0x180   : > { %1277 = vst.msk [vmem:[#allocation2 + $0x8] sm:$0xff] %vm1275_vm4, %v755_v63  ;;  %1284 = vst.msk [vmem:[#allocation2 + $0x40] sm:$0xff] %vm1275_vm4, %v2597_v0  ;;  %825 = vperm.xlu0 %1902, %v755_v63   ;;  %860 = vperm.xlu1 %1903, %v2597_v0   ;;  %v771_v34 = vsub.f32 %v2589_v53, %v755_v63  ;;  %1912 = vpow2.f32 %v786_v33 }
 0x181   : > { %v727_v6 = vpop.xlane.xlu1 %726  ;;  %v741_v10 = vpop.xlane.xlu0 %740  ;;  %1771 = vmatpush3.bf16.msra.mxu0 %v1909_v60  ;;  %1805 = vmatpush3.bf16.msra.mxu1 %v1909_v60 }
 0x182   : > { %v756_v13 = vmax.f32 %v2599_v2, %v727_v6  ;;  %v2610_v14 = vmax.f32 %v2601_v3, %v741_v10  ;;  %v788_v53 = vmul.f32 1.442695, %v771_v34 }
 0x184   : > { %1278 = vst.msk [vmem:[#allocation2 + $0x10] sm:$0xff] %vm1275_vm4, %v756_v13  ;;  %1285 = vst.msk [vmem:[#allocation2 + $0x48] sm:$0xff] %vm1275_vm4, %v2610_v14  ;;  %830 = vperm.xlu0 %1902, %v756_v13   ;;  %865 = vperm.xlu1 %1903, %v2610_v14   ;;  %v772_v48 = vsub.f32 %v2599_v2, %v756_v13  ;;  %1914 = vpow2.f32 %v788_v53 }
 0x185   : > { %v743_v23 = vpop.xlane.xlu1 %742  ;;  %v729_v24 = vpop.xlane.xlu0 %728 }
 0x186   : > { %v2620_v25 = vmax.f32 %v2612_v17, %v743_v23  ;;  %v757_v26 = vmax.f32 %v709_v18, %v729_v24  ;;  %v790_v6 = vmul.f32 1.442695, %v772_v48  ;;  %v2644_v23 = vld [vmem:[#allocation2 + $0x68] sm:$0xff]  ;;  %v713_v48 = vld [vmem:[#allocation2 + $0x38] sm:$0xff] }
 0x187   : > { %v1910_v24 = vld [vmem:[%s2308_s0 + $0x8] sm:$0xff]  }
 0x188   : > { %1286 = vst.msk [vmem:[#allocation2 + $0x50] sm:$0xff] %vm1275_vm4, %v2620_v25  ;;  %1279 = vst.msk [vmem:[#allocation2 + $0x18] sm:$0xff] %vm1275_vm4, %v757_v26  ;;  %870 = vperm.xlu0 %1902, %v2620_v25   ;;  %835 = vperm.xlu1 %1903, %v757_v26   ;;  %v773_v63 = vsub.f32 %v709_v18, %v757_v26  ;;  %1916 = vpow2.f32 %v790_v6 }
 0x189   : > { %v731_v43 = vpop.xlane.xlu1 %730  ;;  %v745_v47 = vpop.xlane.xlu0 %744  ;;  %1772 = vmatprep.subr.bf16.mxu0 %v1910_v24  ;;  %1798 = vmatprep.subr.bf16.mxu1 %v1910_v24 }
 0x18a   : > { %v758_v49 = vmax.f32 %v710_v28, %v731_v43  ;;  %v2632_v51 = vmax.f32 %v2622_v30, %v745_v47  ;;  %v792_v18 = vmul.f32 1.442695, %v773_v63  ;;  %1773 = vmatpush3.bf16.msra.mxu0 %v1910_v24  ;;  %1806 = vmatpush3.bf16.msra.mxu1 %v1910_v24  ;;  %v2654_v47 = vld [vmem:[#allocation2 + $0x70] sm:$0xff] }
 0x18c   : > { %1280 = vst.msk [vmem:[#allocation2 + $0x20] sm:$0xff] %vm1275_vm4, %v758_v49  ;;  %1287 = vst.msk [vmem:[#allocation2 + $0x58] sm:$0xff] %vm1275_vm4, %v2632_v51  ;;  %840 = vperm.xlu0 %1902, %v758_v49   ;;  %875 = vperm.xlu1 %1903, %v2632_v51   ;;  %v774_v10 = vsub.f32 %v710_v28, %v758_v49  ;;  %v1911_v49 = vld [vmem:[%s2308_s0] sm:$0xff]   ;;  %1918 = vpow2.f32 %v792_v18 }
 0x18d   : > { %v747_v2 = vpop.xlane.xlu1 %746  ;;  %v733_v5 = vpop.xlane.xlu0 %732  ;;  %1774 = vmatprep.subr.bf16.mxu0 %v1911_v49  ;;  %1799 = vmatprep.subr.bf16.mxu1 %v1911_v49 }
 0x18e   : > { %v2642_v13 = vmax.f32 %v2634_v55, %v747_v2  ;;  %v759_v20 = vmax.f32 %v711_v57, %v733_v5  ;;  %v794_v33 = vmul.f32 1.442695, %v774_v10  ;;  %1775 = vmatpush3.bf16.msra.mxu0 %v1911_v49  ;;  %1807 = vmatpush3.bf16.msra.mxu1 %v1911_v49  ;;  %v1913_v18 = vpop.eup %1912 }
 0x190   : > { %1288 = vst.msk [vmem:[#allocation2 + $0x60] sm:$0xff] %vm1275_vm4, %v2642_v13  ;;  %1281 = vst.msk [vmem:[#allocation2 + $0x28] sm:$0xff] %vm1275_vm4, %v759_v20  ;;  %880 = vperm.xlu0 %1902, %v2642_v13   ;;  %845 = vperm.xlu1 %1903, %v759_v20   ;;  %v775_v26 = vsub.f32 %v711_v57, %v759_v20  ;;  %v778_v57 = vsub.f32 %v2591_v54, %v2597_v0  ;;  %1920 = vpow2.f32 %v794_v33  ;;  %v721_v20 = vld [vmem:[#allocation2 + $0x78] sm:$0xff] }
 0x191   : > { %v735_v28 = vpop.xlane.xlu1 %734  ;;  %v749_v32 = vpop.xlane.xlu0 %748  ;;  %v779_v0 = vsub.f32 %v2601_v3, %v2610_v14  ;;  %v782_v14 = vsub.f32 %v2634_v55, %v2642_v13 }
 0x192   : > { %v760_v34 = vmax.f32 %v712_v22, %v735_v28  ;;  %v2652_v43 = vmax.f32 %v2644_v23, %v749_v32  ;;  %v796_v53 = vmul.f32 1.442695, %v775_v26  ;;  %v802_v54 = vmul.f32 1.442695, %v778_v57 }
 0x193   : > { %v780_v26 = vsub.f32 %v2612_v17, %v2620_v25  ;;  %v804_v33 = vmul.f32 1.442695, %v779_v0  ;;  %v810_v57 = vmul.f32 1.442695, %v782_v14 }
 0x194   : > { %v776_v60 = vsub.f32 %v712_v22, %v760_v34  ;;  %1282 = vst.msk [vmem:[#allocation2 + $0x30] sm:$0xff] %vm1275_vm4, %v760_v34  ;;  %1289 = vst.msk [vmem:[#allocation2 + $0x68] sm:$0xff] %vm1275_vm4, %v2652_v43  ;;  %850 = vperm.xlu0 %1902, %v760_v34   ;;  %885 = vperm.xlu1 %1903, %v2652_v43   ;;  %1922 = vpow2.f32 %v796_v53  ;;  %v781_v34 = vsub.f32 %v2622_v30, %v2632_v51 }
 0x195   : > { %v751_v63 = vpop.xlane.xlu1 %750  ;;  %v737_v2 = vpop.xlane.xlu0 %736  ;;  %v806_v3 = vmul.f32 1.442695, %v780_v26  ;;  %v783_v25 = vsub.f32 %v2644_v23, %v2652_v43 }
 0x196   : > { %v798_v5 = vmul.f32 1.442695, %v776_v60  ;;  %v768_v6 = vmax.f32 %v2654_v47, %v751_v63  ;;  %v761_v10 = vmax.f32 %v713_v48, %v737_v2  ;;  %v808_v17 = vmul.f32 1.442695, %v781_v34 }
 0x197   : > { %v812_v51 = vmul.f32 1.442695, %v783_v25 }
 0x198   : > { %1290 = vst.msk [vmem:[#allocation2 + $0x70] sm:$0xff] %vm1275_vm4, %v768_v6  ;;  %v777_v22 = vsub.f32 %v713_v48, %v761_v10  ;;  %1283 = vst.msk [vmem:[#allocation2 + $0x38] sm:$0xff] %vm1275_vm4, %v761_v10  ;;  %890 = vperm.xlu0 %1902, %v768_v6   ;;  %855 = vperm.xlu1 %1903, %v761_v10   ;;  %1924 = vpow2.f32 %v798_v5  ;;  %v1915_v48 = vpop.eup %1914  ;;  %v784_v53 = vsub.f32 %v2654_v47, %v768_v6 }
 0x199   : > { %v753_v24 = vpop.xlane.xlu0 %752  ;;  %1926 = vpow2.f32 %v802_v54  ;;  %v1917_v49 = vpop.eup %1916 }
 0x19a   : > { %v800_v28 = vmul.f32 1.442695, %v777_v22  ;;  %v769_v32 = vmax.f32 %v721_v20, %v753_v24  ;;  %v1919_v60 = vpop.eup %1918  ;;  %v814_v13 = vmul.f32 1.442695, %v784_v53 }
 0x19c   : > { %1291 = vst.msk [vmem:[#allocation2 + $0x78] sm:$0xff] %vm1275_vm4, %v769_v32  ;;  %980 = vperm.xlu0 %1902, %v1913_v18   ;;  %895 = vperm.xlu1 %1903, %v769_v32   ;;  %1928 = vpow2.f32 %v800_v28  ;;  %v785_v63 = vsub.f32 %v721_v20, %v769_v32  ;;  %vm1712_vm4 = vmpackc.low %vm2398_vm13, %vm2390_vm12 }
 0x19d   : > { %1930 = vpow2.f32 %v804_v33  ;;  %v1921_v30 = vpop.eup %1920  ;;  %vm1715_vm12 = vmpackc.low %vm2428_vm2, %vm2420_vm1  ;;  %vm3041_vm2 = vnez %v3038_v8  ;;  %v964_v8 = vld [vmem:[%s2303_s8 + $0x10] sm:$0xff] }
 0x19e   : > { %1932 = vpow2.f32 %v806_v3  ;;  %v816_v23 = vmul.f32 1.442695, %v785_v63  ;;  %vm1727_vm13 = vmpackc.low %vm2452_vm6, %vm2433_vm3  ;;  %vm3042_vm3 = vnez %v3040_v44 }
 0x19f   : > { %1934 = vpow2.f32 %v808_v17  ;;  %vm1721_vm1 = vmpackc.low %vm2561_vm14, %vm2544_vm9 }
 0x1a0   : > { %990 = vperm.xlu0 %1902, %v1917_v49   ;;  %985 = vperm.xlu1 %1903, %v1915_v48   ;;  %1936 = vpow2.f32 %v810_v57  ;;  %vm1733_vm6 = vmpackc.low %vm3042_vm3, %vm3041_vm2 }
 0x1a1   : > { %v1923_v55 = vpop.eup %1922  ;;  %1938 = vpow2.f32 %v812_v51 }
 0x1a2   : > { %1940 = vpow2.f32 %v814_v13 }
 0x1a3   : > { %1942 = vpow2.f32 %v816_v23 }
 0x1a4   : > { %1000 = vperm.xlu0 %1902, %v1921_v30   ;;  %995 = vperm.xlu1 %1903, %v1919_v60  }
 0x1a5   : > { %v1925_v2 = vpop.eup %1924 }
 0x1a6   : > { %v1927_v5 = vpop.eup %1926 }
 0x1a8   : > { %1010 = vperm.xlu0 %1902, %v1925_v2   ;;  %1005 = vperm.xlu1 %1903, %v1923_v55  }
 0x1a9   : > { %v1929_v43 = vpop.eup %1928 }
 0x1aa   : > { %v1931_v47 = vpop.eup %1930 }
 0x1ab   : > { %v1933_v6 = vpop.eup %1932 }
 0x1ac   : > { %1020 = vperm.xlu0 %1902, %v1927_v5   ;;  %1015 = vperm.xlu1 %1903, %v1929_v43   ;;  %v1935_v10 = vpop.eup %1934 }
 0x1ad   : > { %v1937_v22 = vpop.eup %1936 }
 0x1ae   : > { %v1939_v20 = vpop.eup %1938 }
 0x1af   : > { %v1941_v54 = vpop.eup %1940 }
 0x1b0   : > { %1030 = vperm.xlu0 %1902, %v1933_v6   ;;  %1025 = vperm.xlu1 %1903, %v1931_v47   ;;  %v1943_v0 = vpop.eup %1942 }
 0x1b4   : > { %1040 = vperm.xlu0 %1902, %v1937_v22   ;;  %1035 = vperm.xlu1 %1903, %v1935_v10  }
 0x1b8   : > { %1050 = vperm.xlu0 %1902, %v1941_v54   ;;  %1045 = vperm.xlu1 %1903, %v1939_v20  }
 0x1bc   : > { %1055 = vperm.xlu1 %1903, %v1943_v0  }
 0x1f7   : > { %v821_v24 = vpop.permute.xlu1 %820 }
 0x1f8   : > { %v898_v18 = vsub.f32 %v2426_v40, %v821_v24 }
 0x1fa   : > { %v914_v32 = vmul.f32 1.442695, %v898_v18 }
 0x1fb   : > { %v861_v26 = vpop.permute.xlu1 %860  ;;  %v826_v28 = vpop.permute.xlu0 %825 }
 0x1fc   : > { %v906_v33 = vsub.f32 %v2445_v52, %v861_v26  ;;  %v899_v34 = vsub.f32 %v2450_v58, %v826_v28  ;;  %1944 = vpow2.f32 %v914_v32 }
 0x1fe   : > { %v916_v48 = vmul.f32 1.442695, %v899_v34  ;;  %v930_v3 = vmul.f32 1.442695, %v906_v33 }
 0x1ff   : > { %v866_v14 = vpop.permute.xlu1 %865  ;;  %v831_v49 = vpop.permute.xlu0 %830 }
 0x200   : > { %v907_v17 = vsub.f32 %v2467_v11, %v866_v14  ;;  %v900_v25 = vsub.f32 %v2475_v4, %v831_v49  ;;  %1946 = vpow2.f32 %v916_v48 }
 0x201   : > { %1948 = vpow2.f32 %v930_v3 }
 0x202   : > { %v932_v60 = vmul.f32 1.442695, %v907_v17  ;;  %v918_v40 = vmul.f32 1.442695, %v900_v25 }
 0x203   : > { %v836_v57 = vpop.permute.xlu1 %835  ;;  %v871_v53 = vpop.permute.xlu0 %870 }
 0x204   : > { %1950 = vpow2.f32 %v932_v60  ;;  %v901_v52 = vsub.f32 %v2487_v29, %v836_v57  ;;  %v908_v58 = vsub.f32 %v2492_v36, %v871_v53 }
 0x205   : > { %1952 = vpow2.f32 %v918_v40 }
 0x206   : > { %v920_v30 = vmul.f32 1.442695, %v901_v52  ;;  %v934_v51 = vmul.f32 1.442695, %v908_v58 }
 0x207   : > { %v876_v55 = vpop.permute.xlu1 %875  ;;  %v841_v13 = vpop.permute.xlu0 %840 }
 0x208   : > { %1954 = vpow2.f32 %v920_v30  ;;  %v909_v11 = vsub.f32 %v2512_v50, %v876_v55  ;;  %v902_v4 = vsub.f32 %v2516_v56, %v841_v13  ;;  %v962_v30 = vld [vmem:[%s2303_s8] sm:$0xff]  ;;  %v965_v55 = vld [vmem:[%s2303_s8 + $0x18] sm:$0xff]  ;;  %v972_v13 = vld [vmem:[%s2303_s8 + $0x50] sm:$0xff] }
 0x209   : > { %1956 = vpow2.f32 %v934_v51  ;;  %v1945_v43 = vpop.eup %1944 }
 0x20a   : > { %v936_v63 = vmul.f32 1.442695, %v909_v11  ;;  %v922_v2 = vmul.f32 1.442695, %v902_v4 }
 0x20b   : > { %v846_v5 = vpop.permute.xlu1 %845  ;;  %v881_v23 = vpop.permute.xlu0 %880 }
 0x20c   : > { %1958 = vpow2.f32 %v936_v63  ;;  %v903_v29 = vsub.f32 %v2532_v9, %v846_v5  ;;  %v910_v36 = vsub.f32 %v2540_v16, %v881_v23  ;;  %v963_v5 = vld [vmem:[%s2303_s8 + $0x8] sm:$0xff]  ;;  %v970_v23 = vld [vmem:[%s2303_s8 + $0x40] sm:$0xff] }
 0x20d   : > { %v1947_v47 = vpop.eup %1946  ;;  %1960 = vpow2.f32 %v922_v2 }
 0x20e   : > { %v924_v6 = vmul.f32 1.442695, %v903_v29  ;;  %v938_v50 = vmul.f32 1.442695, %v910_v36  ;;  %v1713_v22 = vpack.c.bf16 %v1947_v47, %v1945_v43  ;;  %v1949_v20 = vpop.eup %1948 }
 0x20f   : > { %v886_v56 = vpop.permute.xlu1 %885  ;;  %v851_v10 = vpop.permute.xlu0 %850 }
 0x210   : > { %1962 = vpow2.f32 %v924_v6  ;;  %v911_v54 = vsub.f32 %v2553_v27, %v886_v56  ;;  %v904_v9 = vsub.f32 %v2557_v31, %v851_v10  ;;  %1776 = vmatprep.mubr.msk.bf16.mxu0 %vm1712_vm4, %v1713_v22 }
 0x211   : > { %v1951_v16 = vpop.eup %1950  ;;  %1964 = vpow2.f32 %v938_v50  ;;  %v973_v50 = vld [vmem:[%s2303_s8 + $0x58] sm:$0xff] }
 0x212   : > { %v940_v1 = vmul.f32 1.442695, %v911_v54  ;;  %v1725_v7 = vpack.c.bf16 %v1951_v16, %v1949_v20  ;;  %v926_v0 = vmul.f32 1.442695, %v904_v9  ;;  %v1953_v26 = vpop.eup %1952  ;;  %v971_v16 = vld [vmem:[%s2303_s8 + $0x48] sm:$0xff] }
 0x213   : > { %v856_v24 = vpop.permute.xlu1 %855  ;;  %v891_v18 = vpop.permute.xlu0 %890 }
 0x214   : > { %1966 = vpow2.f32 %v940_v1  ;;  %v905_v28 = vsub.f32 %v2571_v37, %v856_v24  ;;  %v912_v27 = vsub.f32 %v2575_v38, %v891_v18  ;;  %1784 = vmatprep.mubr.msk.bf16.mxu1 %vm1724_vm8, %v1725_v7 }
 0x215   : > { %v1955_v31 = vpop.eup %1954  ;;  %1968 = vpow2.f32 %v926_v0 }
 0x216   : > { %v928_v15 = vmul.f32 1.442695, %v905_v28  ;;  %v1716_v21 = vpack.c.bf16 %v1955_v31, %v1953_v26  ;;  %v942_v32 = vmul.f32 1.442695, %v912_v27  ;;  %v1957_v34 = vpop.eup %1956 }
 0x217   : > { %v896_v33 = vpop.permute.xlu1 %895  ;;  %v981_v12 = vpop.permute.xlu0 %980 }
 0x218   : > { %1970 = vpow2.f32 %v928_v15  ;;  %v913_v48 = vsub.f32 %v2585_v46, %v896_v33  ;;  %1777 = vmatmul.mubr.msk.bf16.vlgmr.msra.gmra.mxu0 %vm1715_vm12, %v1716_v21  ;;  %v1058_v63 = vmul.f32 %v981_v12, %v962_v30 }
 0x219   : > { %v1959_v37 = vpop.eup %1958  ;;  %1972 = vpow2.f32 %v942_v32  ;;  %v968_v32 = vld [vmem:[%s2303_s8 + $0x30] sm:$0xff] }
 0x21a   : > { %v944_v35 = vmul.f32 1.442695, %v913_v48  ;;  %v1728_v38 = vpack.c.bf16 %v1959_v37, %v1957_v34  ;;  %v1961_v41 = vpop.eup %1960  ;;  %v966_v34 = vld [vmem:[%s2303_s8 + $0x20] sm:$0xff]  ;;  %v969_v37 = vld [vmem:[%s2303_s8 + $0x38] sm:$0xff] }
 0x21b   : > { %v986_v19 = vpop.permute.xlu1 %985  ;;  %v991_v60 = vpop.permute.xlu0 %990 }
 0x21c   : > { %1974 = vpow2.f32 %v944_v35  ;;  %1785 = vmatmul.mubr.msk.bf16.vlgmr.msra.gmra.mxu1 %vm1727_vm13, %v1728_v38  ;;  %v1060_v51 = vmul.f32 %v991_v60, %v964_v8  ;;  %v1059_v22 = vmul.f32 %v986_v19, %v963_v5  ;;  %v976_v35 = vld [vmem:[%s2303_s8 + $0x70] sm:$0xff] }
 0x21d   : > { %v1963_v3 = vpop.eup %1962 }
 0x21e   : > { %v1719_v46 = vpack.c.bf16 %v1963_v3, %v1961_v41  ;;  %v1965_v14 = vpop.eup %1964 }
 0x21f   : > { %v996_v62 = vpop.permute.xlu1 %995  ;;  %v1001_v40 = vpop.permute.xlu0 %1000 }
 0x220   : > { %1780 = vmatprep.mubr.msk.bf16.mxu0 %vm1718_vm15, %v1719_v46  ;;  %v1061_v36 = vmul.f32 %v996_v62, %v965_v55  ;;  %v1062_v3 = vmul.f32 %v1001_v40, %v966_v34 }
 0x221   : > { %v1967_v49 = vpop.eup %1966 }
 0x222   : > { %v1731_v45 = vpack.c.bf16 %v1967_v49, %v1965_v14  ;;  %v1969_v59 = vpop.eup %1968  ;;  %v967_v14 = vld [vmem:[%s2303_s8 + $0x28] sm:$0xff]  ;;  %v974_v49 = vld [vmem:[%s2303_s8 + $0x60] sm:$0xff] }
 0x223   : > { %v2726_v57 = vpop.permute.xlu1 %1005  ;;  %v1011_v53 = vpop.permute.xlu0 %1010 }
 0x224   : > { %1788 = vmatprep.mubr.msk.bf16.mxu1 %vm1730_vm0, %v1731_v45  ;;  %v1064_v48 = vmul.f32 %v1011_v53, %v968_v32  ;;  %v1063_v19 = vmul.f32 %v2726_v57, %v967_v14  ;;  %v975_v53 = vld [vmem:[%s2303_s8 + $0x68] sm:$0xff] }
 0x225   : > { %v1971_v17 = vpop.eup %1970 }
 0x226   : > { %v1722_v39 = vpack.c.bf16 %v1971_v17, %v1969_v59  ;;  %v1973_v42 = vpop.eup %1972 }
 0x227   : > { %v1016_v52 = vpop.permute.xlu1 %1015  ;;  %v1021_v58 = vpop.permute.xlu0 %1020 }
 0x228   : > { %1781 = vmatmul.mubr.msk.bf16.gmra.mxu0 %vm1721_vm1, %v1722_v39  ;;  %v1066_v20 = vmul.f32 %v1021_v58, %v970_v23  ;;  %v1065_v59 = vmul.f32 %v1016_v52, %v969_v37 }
 0x229   : > { %v1975_v25 = vpop.eup %1974 }
 0x22a   : > { %v1734_v61 = vpack.c.bf16 %v1975_v25, %v1973_v42  ;;  %v977_v25 = vld [vmem:[%s2303_s8 + $0x78] sm:$0xff] }
 0x22b   : > { %v1026_v44 = vpop.permute.xlu1 %1025  ;;  %v1031_v11 = vpop.permute.xlu0 %1030 }
 0x22c   : > { %1789 = vmatmul.mubr.msk.bf16.gmra.mxu1 %vm1733_vm6, %v1734_v61  ;;  %v1068_v43 = vmul.f32 %v1031_v11, %v972_v13  ;;  %v1067_v28 = vmul.f32 %v1026_v44, %v971_v16 }
 0x22f   : > { %v1036_v47 = vpop.permute.xlu1 %1035  ;;  %v1041_v31 = vpop.permute.xlu0 %1040 }
 0x230   : > { %v1069_v0 = vmul.f32 %v1036_v47, %v973_v50  ;;  %v1070_v60 = vmul.f32 %v1041_v31, %v974_v49 }
 0x233   : > { %v1046_v33 = vpop.permute.xlu1 %1045  ;;  %v1051_v38 = vpop.permute.xlu0 %1050 }
 0x234   : > { %v1072_v17 = vmul.f32 %v1051_v38, %v976_v35  ;;  %v1071_v55 = vmul.f32 %v1046_v33, %v975_v53 }
 0x237   : > { %v1056_v39 = vpop.permute.xlu1 %1055 }
 0x238   : > { %v1073_v8 = vmul.f32 %v1056_v39, %v977_v25 }
 0x2d8   : > { %v1778_v4 = vpop.f32.mrf.mxu0 }
 0x2d9   : > { %v1245_v2 = vadd.f32 %v1778_v4, %v1060_v51 }
 0x2da   : > { %v1180_v29 = vpop.f32.mrf.mxu0 }
 0x2db   : > { %1261 = vst [vmem:[%s2303_s8 + $0x10] sm:$0xff] %v1245_v2  ;;  %v1243_v6 = vadd.f32 %v1180_v29, %v1058_v63 }
 0x2dc   : > { %v1779_v56 = vpop.f32.mrf.mxu0  ;;  %v1786_v10 = vpop.f32.mrf.mxu1 }
 0x2dd   : > { %1259 = vst [vmem:[%s2303_s8] sm:$0xff] %v1243_v6  ;;  %v1246_v54 = vadd.f32 %v1779_v56, %v1061_v36  ;;  %v1253_v9 = vadd.f32 %v1786_v10, %v1068_v43 }
 0x2de   : > { %v1183_v1 = vpop.f32.mrf.mxu0  ;;  %v1212_v7 = vpop.f32.mrf.mxu1 }
 0x2df   : > { %1262 = vst [vmem:[%s2303_s8 + $0x18] sm:$0xff] %v1246_v54  ;;  %1269 = vst [vmem:[%s2303_s8 + $0x50] sm:$0xff] %v1253_v9  ;;  %v1244_v24 = vadd.f32 %v1183_v1, %v1059_v22  ;;  %v1251_v18 = vadd.f32 %v1212_v7, %v1066_v20 }
 0x2e0   : > { %v1787_v26 = vpop.f32.mrf.mxu1 }
 0x2e1   : > { %1260 = vst [vmem:[%s2303_s8 + $0x8] sm:$0xff] %v1244_v24  ;;  %1267 = vst [vmem:[%s2303_s8 + $0x40] sm:$0xff] %v1251_v18  ;;  %v1254_v27 = vadd.f32 %v1787_v26, %v1069_v0 }
 0x2e2   : > { %v1215_v15 = vpop.f32.mrf.mxu1 }
 0x2e3   : > { %1270 = vst [vmem:[%s2303_s8 + $0x58] sm:$0xff] %v1254_v27  ;;  %v1252_v21 = vadd.f32 %v1215_v15, %v1067_v28 }
 0x2e5   : > { %1268 = vst [vmem:[%s2303_s8 + $0x48] sm:$0xff] %v1252_v21 }
 0x2e8   : > { %v1782_v41 = vpop.f32.mrf.mxu0 }
 0x2e9   : > { %v1249_v46 = vadd.f32 %v1782_v41, %v1064_v48 }
 0x2ea   : > { %v1196_v45 = vpop.f32.mrf.mxu0 }
 0x2eb   : > { %1265 = vst [vmem:[%s2303_s8 + $0x30] sm:$0xff] %v1249_v46  ;;  %v1247_v42 = vadd.f32 %v1196_v45, %v1062_v3 }
 0x2ec   : > { %v1783_v61 = vpop.f32.mrf.mxu0  ;;  %v1790_v12 = vpop.f32.mrf.mxu1 }
 0x2ed   : > { %1263 = vst [vmem:[%s2303_s8 + $0x20] sm:$0xff] %v1247_v42  ;;  %v1250_v62 = vadd.f32 %v1783_v61, %v1065_v59  ;;  %v1257_v40 = vadd.f32 %v1790_v12, %v1072_v17 }
 0x2ee   : > { %v1199_v52 = vpop.f32.mrf.mxu0  ;;  %v1228_v58 = vpop.f32.mrf.mxu1 }
 0x2ef   : > { %1266 = vst [vmem:[%s2303_s8 + $0x38] sm:$0xff] %v1250_v62  ;;  %1273 = vst [vmem:[%s2303_s8 + $0x70] sm:$0xff] %v1257_v40  ;;  %v1248_v44 = vadd.f32 %v1199_v52, %v1063_v19  ;;  %v1255_v30 = vadd.f32 %v1228_v58, %v1070_v60 }
 0x2f0   : > { %v1791_v51 = vpop.f32.mrf.mxu1 }
 0x2f1   : > { %1264 = vst [vmem:[%s2303_s8 + $0x28] sm:$0xff] %v1248_v44  ;;  %1271 = vst [vmem:[%s2303_s8 + $0x60] sm:$0xff] %v1255_v30  ;;  %v1258_v57 = vadd.f32 %v1791_v51, %v1073_v8 }
 0x2f2   : > { %v1231_v13 = vpop.f32.mrf.mxu1 }
 0x2f3   : > { %1274 = vst [vmem:[%s2303_s8 + $0x78] sm:$0xff] %v1258_v57  ;;  %v1256_v11 = vadd.f32 %v1231_v13, %v1071_v55 }
 0x2f5   : > { %1272 = vst [vmem:[%s2303_s8 + $0x68] sm:$0xff] %v1256_v11 }
 0x2f6 PF: > { %p1736_p0 = scmp.ne.s32.totalorder %s2116_s30, 1 }
 0x2f8   : > { %1295 = sbr.rel (%p1736_p0) target bundleno = 942 (0x3ae), region = 86 }
 0x2fd   : > { %v2763_v4 = vld [vmem:[%s2303_s8 + $0x10] sm:$0xff]  ;;  %v2766_v63 = vld [vmem:[%s2303_s8] sm:$0xff]  ;;  %v2769_v2 = vld [vmem:[%s2303_s8 + $0x18] sm:$0xff]  ;;  %v2138_v5 = vmov 18   ;;  %vm1312_vm10 = vcmask 7168  }
 0x2fe   : > { %1977 = vset.pattern.permute.xlu1 %v2138_v5  ;;  %1976 = vset.pattern.permute.xlu0 %v2138_v5  ;;  %1978 = vrcp.f32 %v2763_v4  ;;  %v2773_v23 = vld [vmem:[%s2303_s8 + $0x8] sm:$0xff]  ;;  %v2781_v36 = vld [vmem:[%s2303_s8 + $0x20] sm:$0xff]  ;;  %v2785_v43 = vld [vmem:[%s2303_s8 + $0x38] sm:$0xff] }
 0x2ff   : > { %1980 = vrcp.f32 %v2766_v63  ;;  %v2777_v29 = vld [vmem:[%s2303_s8 + $0x28] sm:$0xff]  ;;  %v2789_v47 = vld [vmem:[%s2303_s8 + $0x30] sm:$0xff]  ;;  %v2797_v50 = vld [vmem:[%s2303_s8 + $0x40] sm:$0xff] }
 0x300   : > { %1982 = vrcp.f32 %v2769_v2  ;;  %v2793_v6 = vld [vmem:[%s2303_s8 + $0x48] sm:$0xff]  ;;  %v2803_v56 = vld [vmem:[%s2303_s8 + $0x58] sm:$0xff]  ;;  %v2806_v10 = vld [vmem:[%s2303_s8 + $0x50] sm:$0xff] }
 0x301   : > { %1984 = vrcp.f32 %v2773_v23  ;;  %v2811_v20 = vld [vmem:[%s2303_s8 + $0x68] sm:$0xff]  ;;  %v2815_v16 = vld [vmem:[%s2303_s8 + $0x60] sm:$0xff]  ;;  %v2823_v31 = vld [vmem:[%s2303_s8 + $0x78] sm:$0xff] }
 0x302   : > { %1986 = vrcp.f32 %v2777_v29  ;;  %v2827_v34 = vld [vmem:[%s2303_s8 + $0x70] sm:$0xff] }
 0x303   : > { %1988 = vrcp.f32 %v2781_v36 }
 0x304   : > { %1990 = vrcp.f32 %v2785_v43 }
 0x305   : > { %1992 = vrcp.f32 %v2789_v47 }
 0x306   : > { %1994 = vrcp.f32 %v2793_v6 }
 0x307   : > { %1996 = vrcp.f32 %v2797_v50 }
 0x308   : > { %1998 = vrcp.f32 %v2803_v56 }
 0x309   : > { %2000 = vrcp.f32 %v2806_v10 }
 0x30a   : > { %2002 = vrcp.f32 %v2811_v20 }
 0x30b   : > { %v1979_v22 = vpop.eup %1978  ;;  %2004 = vrcp.f32 %v2815_v16 }
 0x30c   : > { %v1981_v54 = vpop.eup %1980  ;;  %v1363_v9 = vmul.f32 %v1979_v22, %v2763_v4  ;;  %2006 = vrcp.f32 %v2823_v31 }
 0x30d   : > { %v1983_v1 = vpop.eup %1982  ;;  %v1361_v7 = vmul.f32 %v1981_v54, %v2766_v63  ;;  %2008 = vrcp.f32 %v2827_v34 }
 0x30e   : > { %v1985_v0 = vpop.eup %1984  ;;  %v1379_v24 = vsub.f32 2.0, %v1363_v9  ;;  %v1364_v18 = vmul.f32 %v1983_v1, %v2769_v2 }
 0x30f   : > { %v1987_v26 = vpop.eup %1986  ;;  %v1377_v28 = vsub.f32 2.0, %v1361_v7  ;;  %v1362_v27 = vmul.f32 %v1985_v0, %v2773_v23 }
 0x310   : > { %v1989_v15 = vpop.eup %1988  ;;  %v1395_v21 = vmul.f32 %v1979_v22, %v1379_v24  ;;  %v1380_v32 = vsub.f32 2.0, %v1364_v18  ;;  %v1366_v33 = vmul.f32 %v1987_v26, %v2777_v29 }
 0x311   : > { %v1991_v48 = vpop.eup %1990  ;;  %v1393_v37 = vmul.f32 %v1981_v54, %v1377_v28  ;;  %v1378_v35 = vsub.f32 2.0, %v1362_v27  ;;  %v1365_v38 = vmul.f32 %v1989_v15, %v2781_v36 }
 0x312   : > { %v1993_v41 = vpop.eup %1992  ;;  %1421 = vperm.xlu1 %1977, %v1395_v21   ;;  %v1396_v3 = vmul.f32 %v1983_v1, %v1380_v32  ;;  %v1382_v46 = vsub.f32 2.0, %v1366_v33  ;;  %v1368_v14 = vmul.f32 %v1991_v48, %v2785_v43 }
 0x313   : > { %v1995_v49 = vpop.eup %1994  ;;  %1411 = vperm.xlu0 %1976, %v1393_v37   ;;  %v1394_v45 = vmul.f32 %v1985_v0, %v1378_v35  ;;  %v1381_v59 = vsub.f32 2.0, %v1365_v38  ;;  %v1367_v17 = vmul.f32 %v1993_v41, %v2789_v47  ;;  %v1296_v37 = vld [vmem:[#allocation2] sm:$0xff]  ;;  %v1297_v35 = vld [vmem:[#allocation2 + $0x8] sm:$0xff]  ;;  %v1298_v38 = vld [vmem:[#allocation2 + $0x10] sm:$0xff] }
 0x314   : > { %v1997_v39 = vpop.eup %1996  ;;  %v1398_v42 = vmul.f32 %v1987_v26, %v1382_v46  ;;  %v1384_v25 = vsub.f32 2.0, %v1368_v14  ;;  %v1370_v61 = vmul.f32 %v1995_v49, %v2793_v6  ;;  %v1301_v46 = vld [vmem:[#allocation2 + $0x28] sm:$0xff]  ;;  %1313 = vst.msk [vmem:[%s2312_s12] sm:$0xff] %vm1312_vm10, %v1296_v37  ;;  %1314 = vst.msk [vmem:[%s2312_s12 + $0x8] sm:$0xff] %vm1312_vm10, %v1297_v35  ;;  %v1302_v14 = vld [vmem:[#allocation2 + $0x30] sm:$0xff] }
 0x315   : > { %v1999_v12 = vpop.eup %1998  ;;  %v1397_v19 = vmul.f32 %v1989_v15, %v1381_v59  ;;  %v1383_v60 = vsub.f32 2.0, %v1367_v17  ;;  %v1369_v62 = vmul.f32 %v1997_v39, %v2797_v50  ;;  %1315 = vst.msk [vmem:[%s2312_s12 + $0x10] sm:$0xff] %vm1312_vm10, %v1298_v38  ;;  %1318 = vst.msk [vmem:[%s2312_s12 + $0x28] sm:$0xff] %vm1312_vm10, %v1301_v46  ;;  %v1305_v59 = vld [vmem:[#allocation2 + $0x48] sm:$0xff]  ;;  %v1306_v17 = vld [vmem:[#allocation2 + $0x50] sm:$0xff] }
 0x316   : > { %1426 = vperm.xlu1 %1977, %v1396_v3   ;;  %v2001_v40 = vpop.eup %2000  ;;  %v1400_v53 = vmul.f32 %v1991_v48, %v1384_v25  ;;  %v1386_v52 = vsub.f32 2.0, %v1370_v61  ;;  %v1372_v58 = vmul.f32 %v1999_v12, %v2803_v56  ;;  %v1300_v3 = vld [vmem:[#allocation2 + $0x20] sm:$0xff]  ;;  %1319 = vst.msk [vmem:[%s2312_s12 + $0x30] sm:$0xff] %vm1312_vm10, %v1302_v14  ;;  %v1309_v25 = vld [vmem:[#allocation2 + $0x68] sm:$0xff]  ;;  %v1310_v61 = vld [vmem:[#allocation2 + $0x70] sm:$0xff] }
 0x317   : > { %1416 = vperm.xlu0 %1976, %v1394_v45   ;;  %v2003_v8 = vpop.eup %2002  ;;  %v1399_v44 = vmul.f32 %v1993_v41, %v1383_v60  ;;  %v1385_v30 = vsub.f32 2.0, %v1369_v62  ;;  %v1371_v51 = vmul.f32 %v2001_v40, %v2806_v10  ;;  %v1299_v41 = vld [vmem:[#allocation2 + $0x18] sm:$0xff]  ;;  %v1304_v45 = vld [vmem:[#allocation2 + $0x40] sm:$0xff]  ;;  %1317 = vst.msk [vmem:[%s2312_s12 + $0x20] sm:$0xff] %vm1312_vm10, %v1300_v3  ;;  %1322 = vst.msk [vmem:[%s2312_s12 + $0x48] sm:$0xff] %vm1312_vm10, %v1305_v59 }
 0x318   : > { %v2005_v55 = vpop.eup %2004  ;;  %v1402_v57 = vmul.f32 %v1995_v49, %v1386_v52  ;;  %v1388_v13 = vsub.f32 2.0, %v1372_v58  ;;  %v1374_v11 = vmul.f32 %v2003_v8, %v2811_v20  ;;  %v1303_v49 = vld [vmem:[#allocation2 + $0x38] sm:$0xff]  ;;  %1316 = vst.msk [vmem:[%s2312_s12 + $0x18] sm:$0xff] %vm1312_vm10, %v1299_v41  ;;  %1321 = vst.msk [vmem:[%s2312_s12 + $0x40] sm:$0xff] %vm1312_vm10, %v1304_v45 }
 0x319   : > { %v2007_v5 = vpop.eup %2006  ;;  %v1401_v22 = vmul.f32 %v1997_v39, %v1385_v30  ;;  %v1387_v54 = vsub.f32 2.0, %v1371_v51  ;;  %v1373_v9 = vmul.f32 %v2005_v55, %v2815_v16  ;;  %v1307_v39 = vld [vmem:[#allocation2 + $0x58] sm:$0xff]  ;;  %1320 = vst.msk [vmem:[%s2312_s12 + $0x38] sm:$0xff] %vm1312_vm10, %v1303_v49  ;;  %1323 = vst.msk [vmem:[%s2312_s12 + $0x50] sm:$0xff] %vm1312_vm10, %v1306_v17 }
 0x31a   : > { %1436 = vperm.xlu1 %1977, %v1398_v42   ;;  %v2009_v1 = vpop.eup %2008  ;;  %v1404_v7 = vmul.f32 %v1999_v12, %v1388_v13  ;;  %v1390_v0 = vsub.f32 2.0, %v1374_v11  ;;  %v1376_v24 = vmul.f32 %v2007_v5, %v2823_v31  ;;  %v1308_v42 = vld [vmem:[#allocation2 + $0x60] sm:$0xff]  ;;  %1324 = vst.msk [vmem:[%s2312_s12 + $0x58] sm:$0xff] %vm1312_vm10, %v1307_v39  ;;  %v1311_v12 = vld [vmem:[#allocation2 + $0x78] sm:$0xff]  ;;  %1326 = vst.msk [vmem:[%s2312_s12 + $0x68] sm:$0xff] %vm1312_vm10, %v1309_v25 }
 0x31b   : > { %1431 = vperm.xlu0 %1976, %v1397_v19   ;;  %v1403_v18 = vmul.f32 %v2001_v40, %v1387_v54  ;;  %v1389_v26 = vsub.f32 2.0, %v1373_v9  ;;  %v1375_v28 = vmul.f32 %v2009_v1, %v2827_v34  ;;  %1325 = vst.msk [vmem:[%s2312_s12 + $0x60] sm:$0xff] %vm1312_vm10, %v1308_v42  ;;  %1327 = vst.msk [vmem:[%s2312_s12 + $0x70] sm:$0xff] %vm1312_vm10, %v1310_v61 }
 0x31c   : > { %v1406_v27 = vmul.f32 %v2003_v8, %v1390_v0  ;;  %v1392_v15 = vsub.f32 2.0, %v1376_v24  ;;  %1328 = vst.msk [vmem:[%s2312_s12 + $0x78] sm:$0xff] %vm1312_vm10, %v1311_v12 }
 0x31d   : > { %v1405_v21 = vmul.f32 %v2005_v55, %v1389_v26  ;;  %v1391_v32 = vsub.f32 2.0, %v1375_v28 }
 0x31e   : > { %1446 = vperm.xlu1 %1977, %v1400_v53   ;;  %v1408_v33 = vmul.f32 %v2007_v5, %v1392_v15 }
 0x31f   : > { %1441 = vperm.xlu0 %1976, %v1399_v44   ;;  %v1407_v48 = vmul.f32 %v2009_v1, %v1391_v32 }
 0x322   : > { %1456 = vperm.xlu1 %1977, %v1402_v57  }
 0x323   : > { %1451 = vperm.xlu0 %1976, %v1401_v22  }
 0x326   : > { %1466 = vperm.xlu1 %1977, %v1404_v7  }
 0x327   : > { %1461 = vperm.xlu0 %1976, %v1403_v18  }
 0x32a   : > { %1476 = vperm.xlu1 %1977, %v1406_v27  }
 0x32b   : > { %1471 = vperm.xlu0 %1976, %v1405_v21  }
 0x32e   : > { %1486 = vperm.xlu1 %1977, %v1408_v33  }
 0x32f   : > { %1481 = vperm.xlu0 %1976, %v1407_v48  }
 0x38d   : > { %v1422_v19 = vpop.permute.xlu1 %1421 }
 0x38e   : > { %v1491_v60 = vmul.f32 %v1422_v19, %v2763_v4  ;;  %v1412_v62 = vpop.permute.xlu0 %1411 }
 0x38f   : > { %v1489_v40 = vmul.f32 %v1412_v62, %v2766_v63 }
 0x390   : > { %1507 = vst [vmem:[%s2303_s8 + $0x10] sm:$0xff] %v1491_v60 }
 0x391   : > { %1505 = vst [vmem:[%s2303_s8] sm:$0xff] %v1489_v40  ;;  %v1427_v53 = vpop.permute.xlu1 %1426 }
 0x392   : > { %v1492_v52 = vmul.f32 %v1427_v53, %v2769_v2  ;;  %v1417_v58 = vpop.permute.xlu0 %1416 }
 0x393   : > { %v1490_v8 = vmul.f32 %v1417_v58, %v2773_v23 }
 0x394   : > { %1508 = vst [vmem:[%s2303_s8 + $0x18] sm:$0xff] %v1492_v52 }
 0x395   : > { %1506 = vst [vmem:[%s2303_s8 + $0x8] sm:$0xff] %v1490_v8  ;;  %v1437_v44 = vpop.permute.xlu1 %1436 }
 0x396   : > { %v1494_v4 = vmul.f32 %v1437_v44, %v2777_v29  ;;  %v1432_v30 = vpop.permute.xlu0 %1431 }
 0x397   : > { %v1493_v63 = vmul.f32 %v1432_v30, %v2781_v36 }
 0x398   : > { %1510 = vst [vmem:[%s2303_s8 + $0x28] sm:$0xff] %v1494_v4 }
 0x399   : > { %1509 = vst [vmem:[%s2303_s8 + $0x20] sm:$0xff] %v1493_v63  ;;  %v1447_v51 = vpop.permute.xlu1 %1446 }
 0x39a   : > { %v1496_v2 = vmul.f32 %v1447_v51, %v2785_v43  ;;  %v1442_v55 = vpop.permute.xlu0 %1441 }
 0x39b   : > { %v1495_v23 = vmul.f32 %v1442_v55, %v2789_v47 }
 0x39c   : > { %1512 = vst [vmem:[%s2303_s8 + $0x38] sm:$0xff] %v1496_v2 }
 0x39d   : > { %1511 = vst [vmem:[%s2303_s8 + $0x30] sm:$0xff] %v1495_v23  ;;  %v1457_v57 = vpop.permute.xlu1 %1456 }
 0x39e   : > { %v1498_v29 = vmul.f32 %v1457_v57, %v2793_v6  ;;  %v1452_v13 = vpop.permute.xlu0 %1451 }
 0x39f   : > { %v1497_v36 = vmul.f32 %v1452_v13, %v2797_v50 }
 0x3a0   : > { %1514 = vst [vmem:[%s2303_s8 + $0x48] sm:$0xff] %v1498_v29 }
 0x3a1   : > { %1513 = vst [vmem:[%s2303_s8 + $0x40] sm:$0xff] %v1497_v36  ;;  %v1467_v11 = vpop.permute.xlu1 %1466 }
 0x3a2   : > { %v1500_v43 = vmul.f32 %v1467_v11, %v2803_v56  ;;  %v1462_v5 = vpop.permute.xlu0 %1461 }
 0x3a3   : > { %v1499_v47 = vmul.f32 %v1462_v5, %v2806_v10 }
 0x3a4   : > { %1516 = vst [vmem:[%s2303_s8 + $0x58] sm:$0xff] %v1500_v43 }
 0x3a5   : > { %1515 = vst [vmem:[%s2303_s8 + $0x50] sm:$0xff] %v1499_v47  ;;  %v1477_v22 = vpop.permute.xlu1 %1476 }
 0x3a6   : > { %v1502_v54 = vmul.f32 %v1477_v22, %v2811_v20  ;;  %v1472_v6 = vpop.permute.xlu0 %1471 }
 0x3a7   : > { %v1501_v9 = vmul.f32 %v1472_v6, %v2815_v16 }
 0x3a8   : > { %1518 = vst [vmem:[%s2303_s8 + $0x68] sm:$0xff] %v1502_v54 }
 0x3a9   : > { %1517 = vst [vmem:[%s2303_s8 + $0x60] sm:$0xff] %v1501_v9  ;;  %v1487_v50 = vpop.permute.xlu1 %1486 }
 0x3aa   : > { %v1504_v1 = vmul.f32 %v1487_v50, %v2823_v31  ;;  %v1482_v7 = vpop.permute.xlu0 %1481 }
 0x3ab   : > { %v1503_v56 = vmul.f32 %v1482_v7, %v2827_v34 }
 0x3ac   : > { %1520 = vst [vmem:[%s2303_s8 + $0x78] sm:$0xff] %v1504_v1 }
 0x3ad   : > { %1519 = vst [vmem:[%s2303_s8 + $0x70] sm:$0xff] %v1503_v56 }
 0x3ae PF: > { %s1743_s0 = sshll.u32 %s2120_s7, 11  ;;  %s1544_s25 = sshll.u32 %s2312_s12, 4  ;;  %s2913_s25 = int_to_ptr.vmem [resolvable:$true] %s1544_s25 }
 0x3af   : > { %s2910_s17 = scalar_lea.hbm %s2980_s6, %s1743_s0  ;;  %s3043_s11 = sand.u32 1, %s2100_s27  }
 0x3b0   : > { %s2917_s16 = scalar_lea.sflag [#allocation7], %s3043_s11  ;;  %s2022_s8 = scalar_lea.vmem %s2913_s25, 2048 }
 0x3b1   : > { %p2023_p1 = scmp.ne.s32.totalorder %s2913_s25, %s2022_s8  ;;  %s2139_s7 = smov [#allocation6]  }
 0x3b2   : > { %s2026_s20 = sshll.u32 %s2139_s7, 4  ;;  %s2027_s20 = int_to_ptr.vmem [resolvable:$false] %s2026_s20 }
 0x3b3   : > { %p2024_p2 = pnand %p2023_p1, %p2252_p12  ;;  %s2028_s18 = scalar_lea.vmem %s2027_s20, 4096 }
 0x3b4   : > { %p2029_p5 = scmp.lt.s32.totalorder %s2913_s25, %s2027_s20  ;;  %p2030_p6 = scmp.lt.s32.totalorder %s2028_s18, %s2022_s8 }
 0x3b5   : > { %p2025_p4 = pneg %p2024_p2 }
 0x3b6   : > { %p2031_p7 = por %p2030_p6, %p2029_p5 }
 0x3b8   : > { %p2032_p8 = pnand %p2031_p7, %p2025_p4 }
 0x3ba   : > { %2035 = shalt.err (!%p2032_p8)
}
 0x3bb   : > { %s2036_s15 = scalar_lea.hbm %s2910_s17, 2048  ;;  %s2040_s21 = scalar_lea.hbm %s2980_s6, 4096 }
 0x3bc   : > { %p2037_p9 = scmp.ne.s32.totalorder %s2910_s17, %s2036_s15  ;;  %p2041_p13 = scmp.lt.s32.totalorder %s2910_s17, %s2980_s6 }
 0x3bd   : > { %p2042_p0 = scmp.lt.s32.totalorder %s2040_s21, %s2036_s15 }
 0x3be   : > { %p2038_p10 = pnand %p2037_p9, %p2252_p12 }
 0x3bf   : > { %p2043_p1 = por %p2042_p0, %p2041_p13 }
 0x3c0   : > { %p2039_p11 = pneg %p2038_p10 }
 0x3c2   : > { %p2044_p2 = pnand %p2043_p1, %p2039_p11 }
 0x3c4   : > { %2047 = shalt.err (!%p2044_p2)
}
 0x3c5   : > { %s2140_s29 = smov 128   ;;  %s2141_s9 = smov 8  }
 0x3c6   : > { %1808 = dma.vmem_to_hbm [thread:$0]  (%p2252_p12), %s2913_s25, 2048, %s2910_s17, %s2917_s16, %s2140_s29, %s2140_s29, %s2141_s9  }
 0x3c7 PF: > { %p1814_p4 = scmp.ge.s32.totalorder %s2132_s10, 2  ;;  %s1567_s13 = sand.u32 1, %s2096_s26  }
 0x3c8   : > { %s1568_s23 = scalar_lea.sflag [#allocation7], %s1567_s13 }
 0x3c9   : > { %p1811_p5 = pnand %p1814_p4, %p2260_p3 }
 0x3cb   : > { %p1812_p6 = pneg %p1811_p5 }
 0x3cd   : > { %2091 = dma.done.wait (%p1812_p6), %s1568_s23, 2048  }
 0x3ce   : > { %2093 = vsyncadd (%p1812_p6), %s1568_s23, 4294965248  ;;  %s26_s10 = sadd.s32 1, %s2132_s10   ;;  %s3044_s0 = sld [smem:[#allocation10_spill]] }
 0x3cf   : > { %p23_p7 = scmp.ge.s32.totalorder %s26_s10, 6   ;;  %s3045_s30 = sld [smem:[#allocation16_spill]] }
 0x3d0   : > { %s3046_s28 = sld [smem:[#allocation11_spill]]  ;;  %s3052_s26 = smov %s2100_s27 }
 0x3d1   : > { %s3047_s29 = sld [smem:[#allocation17_spill]] }
 0x3d2   : > { %s3048_s19 = sld [smem:[#allocation12_spill]] }
 0x3d3   : > { %s3049_s7 = sld [smem:[#allocation13_spill]] }
 0x3d4   : > { %s3050_s8 = sld [smem:[#allocation14_spill]]  ;;  %s3053_s27 = smov %s3044_s0 }
 0x3d5   : > { %s3051_s9 = sld [smem:[#allocation15_spill]]  ;;  %s3054_s0 = smov %s3045_s30 }
 0x3d6   :  { %25 = sbr.rel (!%p23_p7) target bundleno = 21 (0x15), region = 147 }
 0x3d8   : > { %s3055_s30 = smov %s3048_s19 }
 0x3db   :  { %1573 = vsyncpa [#allocation7], 1 }
 0x3dc   :  { %1575 = vsyncpa [#allocation7 + $0x1], 1 }

</bundles_post_ra>
